<compile_context>
chip_gen: v7x
topology: tpu7x:2x2x1
jax: 0.10.0
libtpu: 0.0.40
codegen_flags: <defaults>
</compile_context>

<pallas_src>
import functools

import jax
import jax.numpy as jnp
from jax.experimental import pallas as pl
from jax.experimental.pallas import tpu as pltpu

_NEG_INF = -1e30  # finite "masked" value: avoids -inf - (-inf) = NaN on fully-masked rows


# ----------------------------------------------------------------------------
# In-kernel math
# ----------------------------------------------------------------------------
def _layer_norm(x, gamma, beta, eps=1e-5):
    # PyTorch nn.LayerNorm: biased variance, eps inside rsqrt.  f32 elementwise.
    mu = jnp.mean(x, axis=-1, keepdims=True)
    var = jnp.mean(jnp.square(x - mu), axis=-1, keepdims=True)
    return (x - mu) * jax.lax.rsqrt(var + eps) * gamma + beta


def _attention_heads(q2d, k2d, v2d, bias, h, d_k, d_v, bt, lq, lk):
    """Scaled dot-product attention for all heads of one batch tile.

    q2d: (bt*lq, h*d_k) f32 (softmax scale already folded into the q weights)
    k2d: (bt*lk, h*d_k) f32
    v2d: (bt*lk, h*d_v) f32
    bias: (bt, lq, lk) f32 additive mask bias (0 or -1e30), shared by all heads
    returns (bt*lq, h*d_v) f32 with heads concatenated along the last axis
    (identical ordering to torch's `.transpose(1, 2).reshape(...)`).
    """
    # One bf16 cast per operand, right before the consuming MXU matmuls.
    qb = q2d.astype(jnp.bfloat16)
    kb = k2d.astype(jnp.bfloat16)
    vb = v2d.astype(jnp.bfloat16)
    outs = []
    for i in range(h):  # static unroll; heads are lane slices of the fused projection
        q_h = qb[:, i * d_k:(i + 1) * d_k].reshape(bt, lq, d_k)
        k_h = kb[:, i * d_k:(i + 1) * d_k].reshape(bt, lk, d_k)
        v_h = vb[:, i * d_v:(i + 1) * d_v].reshape(bt, lk, d_v)
        s = jnp.einsum("bqd,bkd->bqk", q_h, k_h,
                       preferred_element_type=jnp.float32) + bias      # (bt, lq, lk)
        s = s - jnp.max(s, axis=-1, keepdims=True)
        p = jnp.exp(s)
        p = p * pl.reciprocal(jnp.sum(p, axis=-1, keepdims=True), approx=True)
        o = jnp.einsum("bqk,bkd->bqd", p.astype(jnp.bfloat16), v_h,
                       preferred_element_type=jnp.float32)              # (bt, lq, d_v)
        outs.append(o)
    return jnp.concatenate(outs, axis=-1).reshape(bt * lq, h * d_v)


def _decoder_layer_kernel(h, d_k1, d_v1, d_k2, d_v2,
                          x_ref, xe_ref, m1_ref, m2_ref,
                          wqkv1_ref, wo1_ref, g1_ref, b1_ref,
                          wq2_ref, wkv2_ref, wo2_ref, g2_ref, b2_ref,
                          wf1_ref, bf1_ref, wf2_ref, bf2_ref, g3_ref, b3_ref,
                          o_ref):
    bt, lq, d_model = x_ref.shape
    lk = xe_ref.shape[1]

    x_bf = x_ref[...].reshape(bt * lq, d_model)        # bf16 matmul operand
    x32 = x_bf.astype(jnp.float32)                     # f32 residual / LN path
    xe_bf = xe_ref[...].reshape(bt * lk, d_model)      # bf16 matmul operand

    # Additive mask biases, computed once per tile (no per-head broadcast copies).
    bias1 = jnp.where(m1_ref[...].astype(jnp.float32) != 0.0, _NEG_INF, 0.0)
    bias2 = jnp.where(m2_ref[...].astype(jnp.float32) != 0.0, _NEG_INF, 0.0)

    # 1) masked multi-head self-attention: ONE fused QKV matmul, then add & norm.
    qkv = jnp.dot(x_bf, wqkv1_ref[...], preferred_element_type=jnp.float32)
    q = qkv[:, : h * d_k1]                      # scale already folded into wq columns
    k = qkv[:, h * d_k1: 2 * h * d_k1]
    v = qkv[:, 2 * h * d_k1:]
    sa = _attention_heads(q, k, v, bias1, h, d_k1, d_v1, bt, lq, lq)
    sa = jnp.dot(sa.astype(jnp.bfloat16), wo1_ref[...],
                 preferred_element_type=jnp.float32)                 # (bt*lq, D)
    x32 = _layer_norm(x32 + sa, g1_ref[...], b1_ref[...])

    # 2) encoder-decoder attention: separate Q matmul, fused KV matmul of x_enc.
    q = jnp.dot(x32.astype(jnp.bfloat16), wq2_ref[...],
                preferred_element_type=jnp.float32)
    kv = jnp.dot(xe_bf, wkv2_ref[...], preferred_element_type=jnp.float32)
    k = kv[:, : h * d_k2]
    v = kv[:, h * d_k2:]
    ca = _attention_heads(q, k, v, bias2, h, d_k2, d_v2, bt, lq, lk)
    ca = jnp.dot(ca.astype(jnp.bfloat16), wo2_ref[...],
                 preferred_element_type=jnp.float32)
    x32 = _layer_norm(x32 + ca, g2_ref[...], b2_ref[...])

    # 3) position-wise feed-forward + add & norm (folded (bt*lq, D) rows).
    hdd = jnp.dot(x32.astype(jnp.bfloat16), wf1_ref[...],
                  preferred_element_type=jnp.float32) + bf1_ref[...]
    hdd = jnp.maximum(hdd, 0.0)
    ff = jnp.dot(hdd.astype(jnp.bfloat16), wf2_ref[...],
                 preferred_element_type=jnp.float32) + bf2_ref[...]
    y = _layer_norm(x32 + ff, g3_ref[...], b3_ref[...])
    o_ref[...] = y.reshape(bt, lq, d_model).astype(o_ref.dtype)


# ----------------------------------------------------------------------------
# Wrapper: weight pre-processing + pallas_call
# ----------------------------------------------------------------------------
def _prep_params(params, h):
    (wq1, wk1, wv1, wo1, g1, b1,
     wq2, wk2, wv2, wo2, g2, b2,
     wf1, bf1, wf2, bf2, g3, b3) = params
    bf16 = lambda a: a.astype(jnp.bfloat16)
    f32 = lambda a: a.astype(jnp.float32)
    d_k1 = wq1.shape[1] // h
    d_k2 = wq2.shape[1] // h
    # Fused projections (fills the 256-wide MXU on v6e/v7x); softmax scale folded into
    # the q columns so the kernel does no runtime scaling.
    wqkv1 = bf16(jnp.concatenate([wq1 * (d_k1 ** -0.5), wk1, wv1], axis=1))
    wq2s = bf16(wq2 * (d_k2 ** -0.5))
    wkv2 = bf16(jnp.concatenate([wk2, wv2], axis=1))
    return (wqkv1, bf16(wo1), f32(g1), f32(b1),
            wq2s, wkv2, bf16(wo2), f32(g2), f32(b2),
            bf16(wf1), f32(bf1), bf16(wf2), f32(bf2), f32(g3), f32(b3))


def decoder_layer(x, x_enc, self_mask, enc_dec_mask, params, *, h, batch_tile=None):
    """x: (B, Lq, D), x_enc: (B, Lk, D); masks: (B, Lq, Lq)/(B, Lq, Lk), nonzero = mask."""
    B, Lq, D = x.shape
    Lk = x_enc.shape[1]
    d_k1 = params[0].shape[1] // h   # wq1
    d_v1 = params[2].shape[1] // h   # wv1
    d_k2 = params[7].shape[1] // h   # wk2
    d_v2 = params[8].shape[1] // h   # wv2

    kparams = _prep_params(params, h)
    m1 = (self_mask != 0).astype(jnp.int8)      # int8 masks: 4x less HBM/VMEM traffic
    m2 = (enc_dec_mask != 0).astype(jnp.int8)

    # Batch rows per grid step: target ~256 query rows per step, but guarantee >= 2
    # grid steps whenever B > 1 so the "parallel" axis can shard across v7x's two
    # TensorCores and the input/output DMA pipelines across steps.
    if batch_tile is None:
        bt = max(1, min(B, max(1, 256 // Lq)))
        if B > 1:
            bt = max(1, min(bt, B // 2))
        while B % bt:
            bt -= 1
    else:
        bt = batch_tile
        assert B % bt == 0
    grid = (B // bt,)

    tile = lambda i: (i, 0, 0)
    # Grid-invariant weights: whole array resident in VMEM, single-buffered (no 2x
    # double-buffer allocation, no per-step re-DMA).
    wspec = pl.BlockSpec(memory_space=pltpu.MemorySpace.VMEM)

    in_specs = [
        pl.BlockSpec((bt, Lq, D), tile),     # x       (bf16)
        pl.BlockSpec((bt, Lk, D), tile),     # x_enc   (bf16)
        pl.BlockSpec((bt, Lq, Lq), tile),    # self-attention mask (int8)
        pl.BlockSpec((bt, Lq, Lk), tile),    # enc-dec attention mask (int8)
    ] + [wspec] * len(kparams)

    kernel = functools.partial(_decoder_layer_kernel, h, d_k1, d_v1, d_k2, d_v2)

    return pl.pallas_call(
        kernel,
        grid=grid,
        in_specs=in_specs,
        out_specs=pl.BlockSpec((bt, Lq, D), tile),
        out_shape=jax.ShapeDtypeStruct((B, Lq, D), jnp.bfloat16),   # bf16 activations out
        compiler_params=pltpu.CompilerParams(
            dimension_semantics=("parallel",),
            vmem_limit_bytes=48 * 1024 * 1024),   # headroom below v7x's 64 MiB VMEM
    )(x.astype(jnp.bfloat16), x_enc.astype(jnp.bfloat16), m1, m2, *kparams)


# ----------------------------------------------------------------------------
# Pure-JAX reference (f32, highest matmul precision) for the correctness check
# ----------------------------------------------------------------------------
def _layer_norm_ref(x, gamma, beta, eps=1e-5):
    mu = jnp.mean(x, axis=-1, keepdims=True)
    var = jnp.mean(jnp.square(x - mu), axis=-1, keepdims=True)
    return (x - mu) * jax.lax.rsqrt(var + eps) * gamma + beta


def _mha_ref(xq, xkv, mask, wq, wk, wv, wo, h):
    hp = jax.lax.Precision.HIGHEST
    B, Lq, _ = xq.shape
    Lk = xkv.shape[1]
    d_qk = wq.shape[1] // h
    d_v = wv.shape[1] // h
    q = jnp.dot(xq, wq, precision=hp).reshape(B, Lq, h, d_qk).transpose(0, 2, 1, 3)
    k = jnp.dot(xkv, wk, precision=hp).reshape(B, Lk, h, d_qk).transpose(0, 2, 1, 3)
    v = jnp.dot(xkv, wv, precision=hp).reshape(B, Lk, h, d_v).transpose(0, 2, 1, 3)
    s = jnp.einsum("bhqd,bhkd->bhqk", q, k, precision=hp)
    s = jnp.where(mask[:, None] != 0, -jnp.inf, s)
    p = jax.nn.softmax(d_qk ** (-0.5) * s, axis=-1)
    o = jnp.einsum("bhqk,bhkd->bhqd", p, v, precision=hp)
    o = o.transpose(0, 2, 1, 3).reshape(B, Lq, h * d_v)
    return jnp.dot(o, wo, precision=hp)


def decoder_layer_reference(x, x_enc, self_mask, enc_dec_mask, params, *, h):
    hp = jax.lax.Precision.HIGHEST
    (wq1, wk1, wv1, wo1, g1, b1,
     wq2, wk2, wv2, wo2, g2, b2,
     wf1, bf1, wf2, bf2, g3, b3) = params
    x = _layer_norm_ref(x + _mha_ref(x, x, self_mask, wq1, wk1, wv1, wo1, h), g1, b1)
    x = _layer_norm_ref(x + _mha_ref(x, x_enc, enc_dec_mask, wq2, wk2, wv2, wo2, h),
                        g2, b2)
    hdd = jnp.maximum(jnp.dot(x, wf1, precision=hp) + bf1, 0.0)
    ff = jnp.dot(hdd, wf2, precision=hp) + bf2
    return _layer_norm_ref(x + ff, g3, b3)


# ----------------------------------------------------------------------------
# Parameter construction + example run
# ----------------------------------------------------------------------------
def init_params(key, d_model, d_k, d_v, h, d_ff):
    ks = jax.random.split(key, 10)
    s = 0.05

    def w(k, shape):
        return (s * jax.random.normal(k, shape)).astype(jnp.float32)

    return (
        # self-attention (head dim d_k for q/k, d_v for v)
        w(ks[0], (d_model, h * d_k)),          # wq1
        w(ks[1], (d_model, h * d_k)),          # wk1
        w(ks[2], (d_model, h * d_v)),          # wv1
        w(ks[3], (h * d_v, d_model)),          # wo1
        jnp.ones((1, d_model), jnp.float32),   # ln1 gamma
        jnp.zeros((1, d_model), jnp.float32),  # ln1 beta
        # enc-dec attention (module builds it with d_k = d_v)
        w(ks[4], (d_model, h * d_v)),          # wq2
        w(ks[5], (d_model, h * d_v)),          # wk2
        w(ks[6], (d_model, h * d_v)),          # wv2
        w(ks[7], (h * d_v, d_model)),          # wo2
        jnp.ones((1, d_model), jnp.float32),   # ln2 gamma
        jnp.zeros((1, d_model), jnp.float32),  # ln2 beta
        # position-wise feed-forward
        w(ks[8], (d_model, d_ff)),             # linear_1 weight
        jnp.zeros((1, d_ff), jnp.float32),     # linear_1 bias
        w(ks[9], (d_ff, d_model)),             # linear_2 weight
        jnp.zeros((1, d_model), jnp.float32),  # linear_2 bias
        jnp.ones((1, d_model), jnp.float32),   # ln3 gamma
        jnp.zeros((1, d_model), jnp.float32),  # ln3 beta
    )


if __name__ == "__main__":
    B, Lq, Lk = 2, 8, 16
    d_model, d_k, d_v, h, d_ff = 32, 8, 8, 4, 64

    key = jax.random.PRNGKey(0)
    kx, ke, kp = jax.random.split(key, 3)

    x = jax.random.normal(kx, (B, Lq, d_model), dtype=jnp.float32)
    x_enc = jax.random.normal(ke, (B, Lk, d_model), dtype=jnp.float32)

    # causal self-attention mask (nonzero = masked), identical for every batch row
    causal = jnp.triu(jnp.ones((Lq, Lq), jnp.float32), k=1)
    self_mask = jnp.broadcast_to(causal, (B, Lq, Lq))
    # no masking for encoder-decoder attention
    enc_dec_mask = jnp.zeros((B, Lq, Lk), jnp.float32)

    params = init_params(kp, d_model, d_k, d_v, h, d_ff)

    out = decoder_layer(x, x_enc, self_mask, enc_dec_mask, params, h=h)
    out = jax.block_until_ready(out)

    ref = decoder_layer_reference(x, x_enc, self_mask, enc_dec_mask, params, h=h)
    ref = jax.block_until_ready(ref)

    assert out.shape == (B, Lq, d_model)
    assert bool(jnp.all(jnp.isfinite(out.astype(jnp.float32))))
    # bf16 activations in/out + bf16 MXU matmuls vs f32 HIGHEST-precision reference.
    max_err = float(jnp.max(jnp.abs(out.astype(jnp.float32) - ref)))
    assert max_err < 5e-2, f"mismatch vs reference: {max_err}"

    print("KERNEL_OK")
</pallas_src>

<mosaic_0001>
module attributes {stable_mosaic.version = 11 : i64} {
  func.func @_decoder_layer_kernel(%arg0: i32, %arg1: memref<1x8x32xbf16, #tpu.memory_space<vmem>>, %arg2: memref<1x16x32xbf16, #tpu.memory_space<vmem>>, %arg3: memref<1x8x8xi8, #tpu.memory_space<vmem>>, %arg4: memref<1x8x16xi8, #tpu.memory_space<vmem>>, %arg5: memref<32x96xbf16, #tpu.memory_space<vmem>>, %arg6: memref<32x32xbf16, #tpu.memory_space<vmem>>, %arg7: memref<1x32xf32, #tpu.memory_space<vmem>>, %arg8: memref<1x32xf32, #tpu.memory_space<vmem>>, %arg9: memref<32x32xbf16, #tpu.memory_space<vmem>>, %arg10: memref<32x64xbf16, #tpu.memory_space<vmem>>, %arg11: memref<32x32xbf16, #tpu.memory_space<vmem>>, %arg12: memref<1x32xf32, #tpu.memory_space<vmem>>, %arg13: memref<1x32xf32, #tpu.memory_space<vmem>>, %arg14: memref<32x64xbf16, #tpu.memory_space<vmem>>, %arg15: memref<1x64xf32, #tpu.memory_space<vmem>>, %arg16: memref<64x32xbf16, #tpu.memory_space<vmem>>, %arg17: memref<1x32xf32, #tpu.memory_space<vmem>>, %arg18: memref<1x32xf32, #tpu.memory_space<vmem>>, %arg19: memref<1x32xf32, #tpu.memory_space<vmem>>, %arg20: memref<1x8x32xbf16, #tpu.memory_space<vmem>>) attributes {dimension_semantics = [#tpu.dimension_semantics<parallel>], iteration_bounds = array<i64: 2>, scalar_prefetch = 0 : i64, scratch_operands = 0 : i64, tpu.core_type = #tpu.core_type<tc>, window_params = [{transform_indices = @transform_0, window_bounds = array<i64: 1, 8, 32>}, {transform_indices = @transform_1, window_bounds = array<i64: 1, 16, 32>}, {transform_indices = @transform_2, window_bounds = array<i64: 1, 8, 8>}, {transform_indices = @transform_3, window_bounds = array<i64: 1, 8, 16>}, {pipeline_mode = #tpu.pipeline_mode<synchronous>, transform_indices = @transform_4, window_bounds = array<i64: 32, 96>}, {pipeline_mode = #tpu.pipeline_mode<synchronous>, transform_indices = @transform_5, window_bounds = array<i64: 32, 32>}, {pipeline_mode = #tpu.pipeline_mode<synchronous>, transform_indices = @transform_6, window_bounds = array<i64: 1, 32>}, {pipeline_mode = #tpu.pipeline_mode<synchronous>, transform_indices = @transform_7, window_bounds = array<i64: 1, 32>}, {pipeline_mode = #tpu.pipeline_mode<synchronous>, transform_indices = @transform_8, window_bounds = array<i64: 32, 32>}, {pipeline_mode = #tpu.pipeline_mode<synchronous>, transform_indices = @transform_9, window_bounds = array<i64: 32, 64>}, {pipeline_mode = #tpu.pipeline_mode<synchronous>, transform_indices = @transform_10, window_bounds = array<i64: 32, 32>}, {pipeline_mode = #tpu.pipeline_mode<synchronous>, transform_indices = @transform_11, window_bounds = array<i64: 1, 32>}, {pipeline_mode = #tpu.pipeline_mode<synchronous>, transform_indices = @transform_12, window_bounds = array<i64: 1, 32>}, {pipeline_mode = #tpu.pipeline_mode<synchronous>, transform_indices = @transform_13, window_bounds = array<i64: 32, 64>}, {pipeline_mode = #tpu.pipeline_mode<synchronous>, transform_indices = @transform_14, window_bounds = array<i64: 1, 64>}, {pipeline_mode = #tpu.pipeline_mode<synchronous>, transform_indices = @transform_15, window_bounds = array<i64: 64, 32>}, {pipeline_mode = #tpu.pipeline_mode<synchronous>, transform_indices = @transform_16, window_bounds = array<i64: 1, 32>}, {pipeline_mode = #tpu.pipeline_mode<synchronous>, transform_indices = @transform_17, window_bounds = array<i64: 1, 32>}, {pipeline_mode = #tpu.pipeline_mode<synchronous>, transform_indices = @transform_18, window_bounds = array<i64: 1, 32>}, {transform_indices = @transform_19, window_bounds = array<i64: 1, 8, 32>}]} {
    %c0 = arith.constant 0 : index
    %c0_0 = arith.constant 0 : index
    %c0_1 = arith.constant 0 : index
    %0 = vector.load %arg1[%c0, %c0_0, %c0_1] : memref<1x8x32xbf16, #tpu.memory_space<vmem>>, vector<1x8x32xbf16>
    %1 = vector.shape_cast %0 : vector<1x8x32xbf16> to vector<8x32xbf16>
    %2 = arith.extf %1 : vector<8x32xbf16> to vector<8x32xf32>
    %c0_2 = arith.constant 0 : index
    %c0_3 = arith.constant 0 : index
    %c0_4 = arith.constant 0 : index
    %3 = vector.load %arg2[%c0_2, %c0_3, %c0_4] : memref<1x16x32xbf16, #tpu.memory_space<vmem>>, vector<1x16x32xbf16>
    %4 = vector.shape_cast %3 : vector<1x16x32xbf16> to vector<16x32xbf16>
    %c0_5 = arith.constant 0 : index
    %c0_6 = arith.constant 0 : index
    %c0_7 = arith.constant 0 : index
    %5 = vector.load %arg3[%c0_5, %c0_6, %c0_7] : memref<1x8x8xi8, #tpu.memory_space<vmem>>, vector<1x8x8xi8>
    %6 = arith.sitofp %5 : vector<1x8x8xi8> to vector<1x8x8xf32>
    %cst = arith.constant 0.000000e+00 : f32
    %7 = vector.broadcast %cst : f32 to vector<1x8x8xf32>
    %8 = arith.cmpf one, %6, %7 : vector<1x8x8xf32>
    %cst_8 = arith.constant -1.000000e+30 : f32
    %cst_9 = arith.constant 0.000000e+00 : f32
    %9 = vector.broadcast %cst_8 : f32 to vector<1x8x8xf32>
    %10 = vector.broadcast %cst_9 : f32 to vector<1x8x8xf32>
    %11 = arith.select %8, %9, %10 : vector<1x8x8xi1>, vector<1x8x8xf32>
    %c0_10 = arith.constant 0 : index
    %c0_11 = arith.constant 0 : index
    %c0_12 = arith.constant 0 : index
    %12 = vector.load %arg4[%c0_10, %c0_11, %c0_12] : memref<1x8x16xi8, #tpu.memory_space<vmem>>, vector<1x8x16xi8>
    %13 = arith.sitofp %12 : vector<1x8x16xi8> to vector<1x8x16xf32>
    %cst_13 = arith.constant 0.000000e+00 : f32
    %14 = vector.broadcast %cst_13 : f32 to vector<1x8x16xf32>
    %15 = arith.cmpf one, %13, %14 : vector<1x8x16xf32>
    %cst_14 = arith.constant -1.000000e+30 : f32
    %cst_15 = arith.constant 0.000000e+00 : f32
    %16 = vector.broadcast %cst_14 : f32 to vector<1x8x16xf32>
    %17 = vector.broadcast %cst_15 : f32 to vector<1x8x16xf32>
    %18 = arith.select %15, %16, %17 : vector<1x8x16xi1>, vector<1x8x16xf32>
    %c0_16 = arith.constant 0 : index
    %c0_17 = arith.constant 0 : index
    %19 = vector.load %arg5[%c0_16, %c0_17] : memref<32x96xbf16, #tpu.memory_space<vmem>>, vector<32x96xbf16>
    %cst_18 = arith.constant dense<0.000000e+00> : vector<8x96xf32>
    %20 = tpu.matmul %1, %19, %cst_18 {dimension_numbers = #tpu.dot_dimension_numbers<[1], [0], [0], [1], [0, 0, 1, 1], [], []>} : vector<8x32xbf16>, vector<32x96xbf16>, vector<8x96xf32> -> vector<8x96xf32>
    %21 = vector.extract_strided_slice %20 {offsets = [0, 0], sizes = [8, 32], strides = [1, 1]} : vector<8x96xf32> to vector<8x32xf32>
    %22 = vector.extract_strided_slice %20 {offsets = [0, 32], sizes = [8, 32], strides = [1, 1]} : vector<8x96xf32> to vector<8x32xf32>
    %23 = vector.extract_strided_slice %20 {offsets = [0, 64], sizes = [8, 32], strides = [1, 1]} : vector<8x96xf32> to vector<8x32xf32>
    %24 = arith.truncf %21 : vector<8x32xf32> to vector<8x32xbf16>
    %25 = arith.truncf %22 : vector<8x32xf32> to vector<8x32xbf16>
    %26 = arith.truncf %23 : vector<8x32xf32> to vector<8x32xbf16>
    %27 = vector.extract_strided_slice %24 {offsets = [0, 0], sizes = [8, 8], strides = [1, 1]} : vector<8x32xbf16> to vector<8x8xbf16>
    %28 = vector.shape_cast %27 : vector<8x8xbf16> to vector<1x8x8xbf16>
    %29 = vector.extract_strided_slice %25 {offsets = [0, 0], sizes = [8, 8], strides = [1, 1]} : vector<8x32xbf16> to vector<8x8xbf16>
    %30 = vector.shape_cast %29 : vector<8x8xbf16> to vector<1x8x8xbf16>
    %31 = vector.extract_strided_slice %26 {offsets = [0, 0], sizes = [8, 8], strides = [1, 1]} : vector<8x32xbf16> to vector<8x8xbf16>
    %32 = vector.shape_cast %31 : vector<8x8xbf16> to vector<1x8x8xbf16>
    "tpu.trace_start"() <{level = 10 : i32, message = "bqd,bkd->bqk"}> : () -> ()
    %cst_19 = arith.constant dense<0.000000e+00> : vector<1x8x8xf32>
    %33 = tpu.matmul %28, %30, %cst_19 {dimension_numbers = #tpu.dot_dimension_numbers<[2], [2], [1], [1], [0, 0, 0, 1, 1, 1], [0], [0]>} : vector<1x8x8xbf16>, vector<1x8x8xbf16>, vector<1x8x8xf32> -> vector<1x8x8xf32>
    "tpu.trace_stop"() : () -> ()
    %34 = arith.addf %33, %11 : vector<1x8x8xf32>
    %cst_20 = arith.constant dense<0xFF800000> : vector<1x8xf32>
    %35 = vector.multi_reduction <maximumf>, %34, %cst_20 [2] : vector<1x8x8xf32> to vector<1x8xf32>
    %36 = vector.shape_cast %35 : vector<1x8xf32> to vector<1x8x1xf32>
    %37 = vector.broadcast %36 : vector<1x8x1xf32> to vector<1x8x8xf32>
    %38 = arith.subf %34, %37 : vector<1x8x8xf32>
    %39 = math.exp %38 : vector<1x8x8xf32>
    %cst_21 = arith.constant dense<0.000000e+00> : vector<1x8xf32>
    %40 = vector.multi_reduction <add>, %39, %cst_21 [2] : vector<1x8x8xf32> to vector<1x8xf32>
    %41 = vector.shape_cast %40 : vector<1x8xf32> to vector<1x8x1xf32>
    %42 = tpu.reciprocal %41 {approx = true} : vector<1x8x1xf32> -> vector<1x8x1xf32>
    %43 = vector.broadcast %42 : vector<1x8x1xf32> to vector<1x8x8xf32>
    %44 = arith.mulf %39, %43 : vector<1x8x8xf32>
    %45 = arith.truncf %44 : vector<1x8x8xf32> to vector<1x8x8xbf16>
    "tpu.trace_start"() <{level = 10 : i32, message = "bqk,bkd->bqd"}> : () -> ()
    %cst_22 = arith.constant dense<0.000000e+00> : vector<1x8x8xf32>
    %46 = tpu.matmul %45, %32, %cst_22 {dimension_numbers = #tpu.dot_dimension_numbers<[2], [1], [1], [2], [0, 0, 0, 1, 1, 2], [0], [0]>} : vector<1x8x8xbf16>, vector<1x8x8xbf16>, vector<1x8x8xf32> -> vector<1x8x8xf32>
    "tpu.trace_stop"() : () -> ()
    %47 = vector.extract_strided_slice %24 {offsets = [0, 8], sizes = [8, 8], strides = [1, 1]} : vector<8x32xbf16> to vector<8x8xbf16>
    %48 = vector.shape_cast %47 : vector<8x8xbf16> to vector<1x8x8xbf16>
    %49 = vector.extract_strided_slice %25 {offsets = [0, 8], sizes = [8, 8], strides = [1, 1]} : vector<8x32xbf16> to vector<8x8xbf16>
    %50 = vector.shape_cast %49 : vector<8x8xbf16> to vector<1x8x8xbf16>
    %51 = vector.extract_strided_slice %26 {offsets = [0, 8], sizes = [8, 8], strides = [1, 1]} : vector<8x32xbf16> to vector<8x8xbf16>
    %52 = vector.shape_cast %51 : vector<8x8xbf16> to vector<1x8x8xbf16>
    "tpu.trace_start"() <{level = 10 : i32, message = "bqd,bkd->bqk"}> : () -> ()
    %cst_23 = arith.constant dense<0.000000e+00> : vector<1x8x8xf32>
    %53 = tpu.matmul %48, %50, %cst_23 {dimension_numbers = #tpu.dot_dimension_numbers<[2], [2], [1], [1], [0, 0, 0, 1, 1, 1], [0], [0]>} : vector<1x8x8xbf16>, vector<1x8x8xbf16>, vector<1x8x8xf32> -> vector<1x8x8xf32>
    "tpu.trace_stop"() : () -> ()
    %54 = arith.addf %53, %11 : vector<1x8x8xf32>
    %cst_24 = arith.constant dense<0xFF800000> : vector<1x8xf32>
    %55 = vector.multi_reduction <maximumf>, %54, %cst_24 [2] : vector<1x8x8xf32> to vector<1x8xf32>
    %56 = vector.shape_cast %55 : vector<1x8xf32> to vector<1x8x1xf32>
    %57 = vector.broadcast %56 : vector<1x8x1xf32> to vector<1x8x8xf32>
    %58 = arith.subf %54, %57 : vector<1x8x8xf32>
    %59 = math.exp %58 : vector<1x8x8xf32>
    %cst_25 = arith.constant dense<0.000000e+00> : vector<1x8xf32>
    %60 = vector.multi_reduction <add>, %59, %cst_25 [2] : vector<1x8x8xf32> to vector<1x8xf32>
    %61 = vector.shape_cast %60 : vector<1x8xf32> to vector<1x8x1xf32>
    %62 = tpu.reciprocal %61 {approx = true} : vector<1x8x1xf32> -> vector<1x8x1xf32>
    %63 = vector.broadcast %62 : vector<1x8x1xf32> to vector<1x8x8xf32>
    %64 = arith.mulf %59, %63 : vector<1x8x8xf32>
    %65 = arith.truncf %64 : vector<1x8x8xf32> to vector<1x8x8xbf16>
    "tpu.trace_start"() <{level = 10 : i32, message = "bqk,bkd->bqd"}> : () -> ()
    %cst_26 = arith.constant dense<0.000000e+00> : vector<1x8x8xf32>
    %66 = tpu.matmul %65, %52, %cst_26 {dimension_numbers = #tpu.dot_dimension_numbers<[2], [1], [1], [2], [0, 0, 0, 1, 1, 2], [0], [0]>} : vector<1x8x8xbf16>, vector<1x8x8xbf16>, vector<1x8x8xf32> -> vector<1x8x8xf32>
    "tpu.trace_stop"() : () -> ()
    %67 = vector.extract_strided_slice %24 {offsets = [0, 16], sizes = [8, 8], strides = [1, 1]} : vector<8x32xbf16> to vector<8x8xbf16>
    %68 = vector.shape_cast %67 : vector<8x8xbf16> to vector<1x8x8xbf16>
    %69 = vector.extract_strided_slice %25 {offsets = [0, 16], sizes = [8, 8], strides = [1, 1]} : vector<8x32xbf16> to vector<8x8xbf16>
    %70 = vector.shape_cast %69 : vector<8x8xbf16> to vector<1x8x8xbf16>
    %71 = vector.extract_strided_slice %26 {offsets = [0, 16], sizes = [8, 8], strides = [1, 1]} : vector<8x32xbf16> to vector<8x8xbf16>
    %72 = vector.shape_cast %71 : vector<8x8xbf16> to vector<1x8x8xbf16>
    "tpu.trace_start"() <{level = 10 : i32, message = "bqd,bkd->bqk"}> : () -> ()
    %cst_27 = arith.constant dense<0.000000e+00> : vector<1x8x8xf32>
    %73 = tpu.matmul %68, %70, %cst_27 {dimension_numbers = #tpu.dot_dimension_numbers<[2], [2], [1], [1], [0, 0, 0, 1, 1, 1], [0], [0]>} : vector<1x8x8xbf16>, vector<1x8x8xbf16>, vector<1x8x8xf32> -> vector<1x8x8xf32>
    "tpu.trace_stop"() : () -> ()
    %74 = arith.addf %73, %11 : vector<1x8x8xf32>
    %cst_28 = arith.constant dense<0xFF800000> : vector<1x8xf32>
    %75 = vector.multi_reduction <maximumf>, %74, %cst_28 [2] : vector<1x8x8xf32> to vector<1x8xf32>
    %76 = vector.shape_cast %75 : vector<1x8xf32> to vector<1x8x1xf32>
    %77 = vector.broadcast %76 : vector<1x8x1xf32> to vector<1x8x8xf32>
    %78 = arith.subf %74, %77 : vector<1x8x8xf32>
    %79 = math.exp %78 : vector<1x8x8xf32>
    %cst_29 = arith.constant dense<0.000000e+00> : vector<1x8xf32>
    %80 = vector.multi_reduction <add>, %79, %cst_29 [2] : vector<1x8x8xf32> to vector<1x8xf32>
    %81 = vector.shape_cast %80 : vector<1x8xf32> to vector<1x8x1xf32>
    %82 = tpu.reciprocal %81 {approx = true} : vector<1x8x1xf32> -> vector<1x8x1xf32>
    %83 = vector.broadcast %82 : vector<1x8x1xf32> to vector<1x8x8xf32>
    %84 = arith.mulf %79, %83 : vector<1x8x8xf32>
    %85 = arith.truncf %84 : vector<1x8x8xf32> to vector<1x8x8xbf16>
    "tpu.trace_start"() <{level = 10 : i32, message = "bqk,bkd->bqd"}> : () -> ()
    %cst_30 = arith.constant dense<0.000000e+00> : vector<1x8x8xf32>
    %86 = tpu.matmul %85, %72, %cst_30 {dimension_numbers = #tpu.dot_dimension_numbers<[2], [1], [1], [2], [0, 0, 0, 1, 1, 2], [0], [0]>} : vector<1x8x8xbf16>, vector<1x8x8xbf16>, vector<1x8x8xf32> -> vector<1x8x8xf32>
    "tpu.trace_stop"() : () -> ()
    %87 = vector.extract_strided_slice %24 {offsets = [0, 24], sizes = [8, 8], strides = [1, 1]} : vector<8x32xbf16> to vector<8x8xbf16>
    %88 = vector.shape_cast %87 : vector<8x8xbf16> to vector<1x8x8xbf16>
    %89 = vector.extract_strided_slice %25 {offsets = [0, 24], sizes = [8, 8], strides = [1, 1]} : vector<8x32xbf16> to vector<8x8xbf16>
    %90 = vector.shape_cast %89 : vector<8x8xbf16> to vector<1x8x8xbf16>
    %91 = vector.extract_strided_slice %26 {offsets = [0, 24], sizes = [8, 8], strides = [1, 1]} : vector<8x32xbf16> to vector<8x8xbf16>
    %92 = vector.shape_cast %91 : vector<8x8xbf16> to vector<1x8x8xbf16>
    "tpu.trace_start"() <{level = 10 : i32, message = "bqd,bkd->bqk"}> : () -> ()
    %cst_31 = arith.constant dense<0.000000e+00> : vector<1x8x8xf32>
    %93 = tpu.matmul %88, %90, %cst_31 {dimension_numbers = #tpu.dot_dimension_numbers<[2], [2], [1], [1], [0, 0, 0, 1, 1, 1], [0], [0]>} : vector<1x8x8xbf16>, vector<1x8x8xbf16>, vector<1x8x8xf32> -> vector<1x8x8xf32>
    "tpu.trace_stop"() : () -> ()
    %94 = arith.addf %93, %11 : vector<1x8x8xf32>
    %cst_32 = arith.constant dense<0xFF800000> : vector<1x8xf32>
    %95 = vector.multi_reduction <maximumf>, %94, %cst_32 [2] : vector<1x8x8xf32> to vector<1x8xf32>
    %96 = vector.shape_cast %95 : vector<1x8xf32> to vector<1x8x1xf32>
    %97 = vector.broadcast %96 : vector<1x8x1xf32> to vector<1x8x8xf32>
    %98 = arith.subf %94, %97 : vector<1x8x8xf32>
    %99 = math.exp %98 : vector<1x8x8xf32>
    %cst_33 = arith.constant dense<0.000000e+00> : vector<1x8xf32>
    %100 = vector.multi_reduction <add>, %99, %cst_33 [2] : vector<1x8x8xf32> to vector<1x8xf32>
    %101 = vector.shape_cast %100 : vector<1x8xf32> to vector<1x8x1xf32>
    %102 = tpu.reciprocal %101 {approx = true} : vector<1x8x1xf32> -> vector<1x8x1xf32>
    %103 = vector.broadcast %102 : vector<1x8x1xf32> to vector<1x8x8xf32>
    %104 = arith.mulf %99, %103 : vector<1x8x8xf32>
    %105 = arith.truncf %104 : vector<1x8x8xf32> to vector<1x8x8xbf16>
    "tpu.trace_start"() <{level = 10 : i32, message = "bqk,bkd->bqd"}> : () -> ()
    %cst_34 = arith.constant dense<0.000000e+00> : vector<1x8x8xf32>
    %106 = tpu.matmul %105, %92, %cst_34 {dimension_numbers = #tpu.dot_dimension_numbers<[2], [1], [1], [2], [0, 0, 0, 1, 1, 2], [0], [0]>} : vector<1x8x8xbf16>, vector<1x8x8xbf16>, vector<1x8x8xf32> -> vector<1x8x8xf32>
    "tpu.trace_stop"() : () -> ()
    %107 = tpu.concatenate %46, %66, %86, %106 in 2 : vector<1x8x8xf32>, vector<1x8x8xf32>, vector<1x8x8xf32>, vector<1x8x8xf32> -> vector<1x8x32xf32>
    %108 = vector.shape_cast %107 : vector<1x8x32xf32> to vector<8x32xf32>
    %109 = arith.truncf %108 : vector<8x32xf32> to vector<8x32xbf16>
    %c0_35 = arith.constant 0 : index
    %c0_36 = arith.constant 0 : index
    %110 = vector.load %arg6[%c0_35, %c0_36] : memref<32x32xbf16, #tpu.memory_space<vmem>>, vector<32x32xbf16>
    %cst_37 = arith.constant dense<0.000000e+00> : vector<8x32xf32>
    %111 = tpu.matmul %109, %110, %cst_37 {dimension_numbers = #tpu.dot_dimension_numbers<[1], [0], [0], [1], [0, 0, 1, 1], [], []>} : vector<8x32xbf16>, vector<32x32xbf16>, vector<8x32xf32> -> vector<8x32xf32>
    %112 = arith.addf %2, %111 : vector<8x32xf32>
    %c0_38 = arith.constant 0 : index
    %c0_39 = arith.constant 0 : index
    %113 = vector.load %arg7[%c0_38, %c0_39] : memref<1x32xf32, #tpu.memory_space<vmem>>, vector<1x32xf32>
    %c0_40 = arith.constant 0 : index
    %c0_41 = arith.constant 0 : index
    %114 = vector.load %arg8[%c0_40, %c0_41] : memref<1x32xf32, #tpu.memory_space<vmem>>, vector<1x32xf32>
    %cst_42 = arith.constant dense<0.000000e+00> : vector<8xf32>
    %115 = vector.multi_reduction <add>, %112, %cst_42 [1] : vector<8x32xf32> to vector<8xf32>
    %116 = vector.shape_cast %115 : vector<8xf32> to vector<8x1xf32>
    %cst_43 = arith.constant 3.200000e+01 : f32
    %117 = vector.broadcast %cst_43 : f32 to vector<8x1xf32>
    %118 = arith.divf %116, %117 : vector<8x1xf32>
    %119 = vector.broadcast %118 : vector<8x1xf32> to vector<8x32xf32>
    %120 = arith.subf %112, %119 : vector<8x32xf32>
    %121 = arith.mulf %120, %120 : vector<8x32xf32>
    %cst_44 = arith.constant dense<0.000000e+00> : vector<8xf32>
    %122 = vector.multi_reduction <add>, %121, %cst_44 [1] : vector<8x32xf32> to vector<8xf32>
    %123 = vector.shape_cast %122 : vector<8xf32> to vector<8x1xf32>
    %cst_45 = arith.constant 3.200000e+01 : f32
    %124 = vector.broadcast %cst_45 : f32 to vector<8x1xf32>
    %125 = arith.divf %123, %124 : vector<8x1xf32>
    %126 = vector.broadcast %118 : vector<8x1xf32> to vector<8x32xf32>
    %127 = arith.subf %112, %126 : vector<8x32xf32>
    %cst_46 = arith.constant 9.99999974E-6 : f32
    %128 = vector.broadcast %cst_46 : f32 to vector<8x1xf32>
    %129 = arith.addf %125, %128 : vector<8x1xf32>
    %130 = math.rsqrt %129 : vector<8x1xf32>
    %131 = vector.broadcast %130 : vector<8x1xf32> to vector<8x32xf32>
    %132 = arith.mulf %127, %131 : vector<8x32xf32>
    %133 = vector.broadcast %113 : vector<1x32xf32> to vector<8x32xf32>
    %134 = arith.mulf %132, %133 : vector<8x32xf32>
    %135 = vector.broadcast %114 : vector<1x32xf32> to vector<8x32xf32>
    %136 = arith.addf %134, %135 : vector<8x32xf32>
    %137 = arith.truncf %136 : vector<8x32xf32> to vector<8x32xbf16>
    %c0_47 = arith.constant 0 : index
    %c0_48 = arith.constant 0 : index
    %138 = vector.load %arg9[%c0_47, %c0_48] : memref<32x32xbf16, #tpu.memory_space<vmem>>, vector<32x32xbf16>
    %cst_49 = arith.constant dense<0.000000e+00> : vector<8x32xf32>
    %139 = tpu.matmul %137, %138, %cst_49 {dimension_numbers = #tpu.dot_dimension_numbers<[1], [0], [0], [1], [0, 0, 1, 1], [], []>} : vector<8x32xbf16>, vector<32x32xbf16>, vector<8x32xf32> -> vector<8x32xf32>
    %c0_50 = arith.constant 0 : index
    %c0_51 = arith.constant 0 : index
    %140 = vector.load %arg10[%c0_50, %c0_51] : memref<32x64xbf16, #tpu.memory_space<vmem>>, vector<32x64xbf16>
    %cst_52 = arith.constant dense<0.000000e+00> : vector<16x64xf32>
    %141 = tpu.matmul %4, %140, %cst_52 {dimension_numbers = #tpu.dot_dimension_numbers<[1], [0], [0], [1], [0, 0, 1, 1], [], []>} : vector<16x32xbf16>, vector<32x64xbf16>, vector<16x64xf32> -> vector<16x64xf32>
    %142 = vector.extract_strided_slice %141 {offsets = [0, 0], sizes = [16, 32], strides = [1, 1]} : vector<16x64xf32> to vector<16x32xf32>
    %143 = vector.extract_strided_slice %141 {offsets = [0, 32], sizes = [16, 32], strides = [1, 1]} : vector<16x64xf32> to vector<16x32xf32>
    %144 = arith.truncf %139 : vector<8x32xf32> to vector<8x32xbf16>
    %145 = arith.truncf %142 : vector<16x32xf32> to vector<16x32xbf16>
    %146 = arith.truncf %143 : vector<16x32xf32> to vector<16x32xbf16>
    %147 = vector.extract_strided_slice %144 {offsets = [0, 0], sizes = [8, 8], strides = [1, 1]} : vector<8x32xbf16> to vector<8x8xbf16>
    %148 = vector.shape_cast %147 : vector<8x8xbf16> to vector<1x8x8xbf16>
    %149 = vector.extract_strided_slice %145 {offsets = [0, 0], sizes = [16, 8], strides = [1, 1]} : vector<16x32xbf16> to vector<16x8xbf16>
    %150 = vector.shape_cast %149 : vector<16x8xbf16> to vector<1x16x8xbf16>
    %151 = vector.extract_strided_slice %146 {offsets = [0, 0], sizes = [16, 8], strides = [1, 1]} : vector<16x32xbf16> to vector<16x8xbf16>
    %152 = vector.shape_cast %151 : vector<16x8xbf16> to vector<1x16x8xbf16>
    "tpu.trace_start"() <{level = 10 : i32, message = "bqd,bkd->bqk"}> : () -> ()
    %cst_53 = arith.constant dense<0.000000e+00> : vector<1x8x16xf32>
    %153 = tpu.matmul %148, %150, %cst_53 {dimension_numbers = #tpu.dot_dimension_numbers<[2], [2], [1], [1], [0, 0, 0, 1, 1, 1], [0], [0]>} : vector<1x8x8xbf16>, vector<1x16x8xbf16>, vector<1x8x16xf32> -> vector<1x8x16xf32>
    "tpu.trace_stop"() : () -> ()
    %154 = arith.addf %153, %18 : vector<1x8x16xf32>
    %cst_54 = arith.constant dense<0xFF800000> : vector<1x8xf32>
    %155 = vector.multi_reduction <maximumf>, %154, %cst_54 [2] : vector<1x8x16xf32> to vector<1x8xf32>
    %156 = vector.shape_cast %155 : vector<1x8xf32> to vector<1x8x1xf32>
    %157 = vector.broadcast %156 : vector<1x8x1xf32> to vector<1x8x16xf32>
    %158 = arith.subf %154, %157 : vector<1x8x16xf32>
    %159 = math.exp %158 : vector<1x8x16xf32>
    %cst_55 = arith.constant dense<0.000000e+00> : vector<1x8xf32>
    %160 = vector.multi_reduction <add>, %159, %cst_55 [2] : vector<1x8x16xf32> to vector<1x8xf32>
    %161 = vector.shape_cast %160 : vector<1x8xf32> to vector<1x8x1xf32>
    %162 = tpu.reciprocal %161 {approx = true} : vector<1x8x1xf32> -> vector<1x8x1xf32>
    %163 = vector.broadcast %162 : vector<1x8x1xf32> to vector<1x8x16xf32>
    %164 = arith.mulf %159, %163 : vector<1x8x16xf32>
    %165 = arith.truncf %164 : vector<1x8x16xf32> to vector<1x8x16xbf16>
    "tpu.trace_start"() <{level = 10 : i32, message = "bqk,bkd->bqd"}> : () -> ()
    %cst_56 = arith.constant dense<0.000000e+00> : vector<1x8x8xf32>
    %166 = tpu.matmul %165, %152, %cst_56 {dimension_numbers = #tpu.dot_dimension_numbers<[2], [1], [1], [2], [0, 0, 0, 1, 1, 2], [0], [0]>} : vector<1x8x16xbf16>, vector<1x16x8xbf16>, vector<1x8x8xf32> -> vector<1x8x8xf32>
    "tpu.trace_stop"() : () -> ()
    %167 = vector.extract_strided_slice %144 {offsets = [0, 8], sizes = [8, 8], strides = [1, 1]} : vector<8x32xbf16> to vector<8x8xbf16>
    %168 = vector.shape_cast %167 : vector<8x8xbf16> to vector<1x8x8xbf16>
    %169 = vector.extract_strided_slice %145 {offsets = [0, 8], sizes = [16, 8], strides = [1, 1]} : vector<16x32xbf16> to vector<16x8xbf16>
    %170 = vector.shape_cast %169 : vector<16x8xbf16> to vector<1x16x8xbf16>
    %171 = vector.extract_strided_slice %146 {offsets = [0, 8], sizes = [16, 8], strides = [1, 1]} : vector<16x32xbf16> to vector<16x8xbf16>
    %172 = vector.shape_cast %171 : vector<16x8xbf16> to vector<1x16x8xbf16>
    "tpu.trace_start"() <{level = 10 : i32, message = "bqd,bkd->bqk"}> : () -> ()
    %cst_57 = arith.constant dense<0.000000e+00> : vector<1x8x16xf32>
    %173 = tpu.matmul %168, %170, %cst_57 {dimension_numbers = #tpu.dot_dimension_numbers<[2], [2], [1], [1], [0, 0, 0, 1, 1, 1], [0], [0]>} : vector<1x8x8xbf16>, vector<1x16x8xbf16>, vector<1x8x16xf32> -> vector<1x8x16xf32>
    "tpu.trace_stop"() : () -> ()
    %174 = arith.addf %173, %18 : vector<1x8x16xf32>
    %cst_58 = arith.constant dense<0xFF800000> : vector<1x8xf32>
    %175 = vector.multi_reduction <maximumf>, %174, %cst_58 [2] : vector<1x8x16xf32> to vector<1x8xf32>
    %176 = vector.shape_cast %175 : vector<1x8xf32> to vector<1x8x1xf32>
    %177 = vector.broadcast %176 : vector<1x8x1xf32> to vector<1x8x16xf32>
    %178 = arith.subf %174, %177 : vector<1x8x16xf32>
    %179 = math.exp %178 : vector<1x8x16xf32>
    %cst_59 = arith.constant dense<0.000000e+00> : vector<1x8xf32>
    %180 = vector.multi_reduction <add>, %179, %cst_59 [2] : vector<1x8x16xf32> to vector<1x8xf32>
    %181 = vector.shape_cast %180 : vector<1x8xf32> to vector<1x8x1xf32>
    %182 = tpu.reciprocal %181 {approx = true} : vector<1x8x1xf32> -> vector<1x8x1xf32>
    %183 = vector.broadcast %182 : vector<1x8x1xf32> to vector<1x8x16xf32>
    %184 = arith.mulf %179, %183 : vector<1x8x16xf32>
    %185 = arith.truncf %184 : vector<1x8x16xf32> to vector<1x8x16xbf16>
    "tpu.trace_start"() <{level = 10 : i32, message = "bqk,bkd->bqd"}> : () -> ()
    %cst_60 = arith.constant dense<0.000000e+00> : vector<1x8x8xf32>
    %186 = tpu.matmul %185, %172, %cst_60 {dimension_numbers = #tpu.dot_dimension_numbers<[2], [1], [1], [2], [0, 0, 0, 1, 1, 2], [0], [0]>} : vector<1x8x16xbf16>, vector<1x16x8xbf16>, vector<1x8x8xf32> -> vector<1x8x8xf32>
    "tpu.trace_stop"() : () -> ()
    %187 = vector.extract_strided_slice %144 {offsets = [0, 16], sizes = [8, 8], strides = [1, 1]} : vector<8x32xbf16> to vector<8x8xbf16>
    %188 = vector.shape_cast %187 : vector<8x8xbf16> to vector<1x8x8xbf16>
    %189 = vector.extract_strided_slice %145 {offsets = [0, 16], sizes = [16, 8], strides = [1, 1]} : vector<16x32xbf16> to vector<16x8xbf16>
    %190 = vector.shape_cast %189 : vector<16x8xbf16> to vector<1x16x8xbf16>
    %191 = vector.extract_strided_slice %146 {offsets = [0, 16], sizes = [16, 8], strides = [1, 1]} : vector<16x32xbf16> to vector<16x8xbf16>
    %192 = vector.shape_cast %191 : vector<16x8xbf16> to vector<1x16x8xbf16>
    "tpu.trace_start"() <{level = 10 : i32, message = "bqd,bkd->bqk"}> : () -> ()
    %cst_61 = arith.constant dense<0.000000e+00> : vector<1x8x16xf32>
    %193 = tpu.matmul %188, %190, %cst_61 {dimension_numbers = #tpu.dot_dimension_numbers<[2], [2], [1], [1], [0, 0, 0, 1, 1, 1], [0], [0]>} : vector<1x8x8xbf16>, vector<1x16x8xbf16>, vector<1x8x16xf32> -> vector<1x8x16xf32>
    "tpu.trace_stop"() : () -> ()
    %194 = arith.addf %193, %18 : vector<1x8x16xf32>
    %cst_62 = arith.constant dense<0xFF800000> : vector<1x8xf32>
    %195 = vector.multi_reduction <maximumf>, %194, %cst_62 [2] : vector<1x8x16xf32> to vector<1x8xf32>
    %196 = vector.shape_cast %195 : vector<1x8xf32> to vector<1x8x1xf32>
    %197 = vector.broadcast %196 : vector<1x8x1xf32> to vector<1x8x16xf32>
    %198 = arith.subf %194, %197 : vector<1x8x16xf32>
    %199 = math.exp %198 : vector<1x8x16xf32>
    %cst_63 = arith.constant dense<0.000000e+00> : vector<1x8xf32>
    %200 = vector.multi_reduction <add>, %199, %cst_63 [2] : vector<1x8x16xf32> to vector<1x8xf32>
    %201 = vector.shape_cast %200 : vector<1x8xf32> to vector<1x8x1xf32>
    %202 = tpu.reciprocal %201 {approx = true} : vector<1x8x1xf32> -> vector<1x8x1xf32>
    %203 = vector.broadcast %202 : vector<1x8x1xf32> to vector<1x8x16xf32>
    %204 = arith.mulf %199, %203 : vector<1x8x16xf32>
    %205 = arith.truncf %204 : vector<1x8x16xf32> to vector<1x8x16xbf16>
    "tpu.trace_start"() <{level = 10 : i32, message = "bqk,bkd->bqd"}> : () -> ()
    %cst_64 = arith.constant dense<0.000000e+00> : vector<1x8x8xf32>
    %206 = tpu.matmul %205, %192, %cst_64 {dimension_numbers = #tpu.dot_dimension_numbers<[2], [1], [1], [2], [0, 0, 0, 1, 1, 2], [0], [0]>} : vector<1x8x16xbf16>, vector<1x16x8xbf16>, vector<1x8x8xf32> -> vector<1x8x8xf32>
    "tpu.trace_stop"() : () -> ()
    %207 = vector.extract_strided_slice %144 {offsets = [0, 24], sizes = [8, 8], strides = [1, 1]} : vector<8x32xbf16> to vector<8x8xbf16>
    %208 = vector.shape_cast %207 : vector<8x8xbf16> to vector<1x8x8xbf16>
    %209 = vector.extract_strided_slice %145 {offsets = [0, 24], sizes = [16, 8], strides = [1, 1]} : vector<16x32xbf16> to vector<16x8xbf16>
    %210 = vector.shape_cast %209 : vector<16x8xbf16> to vector<1x16x8xbf16>
    %211 = vector.extract_strided_slice %146 {offsets = [0, 24], sizes = [16, 8], strides = [1, 1]} : vector<16x32xbf16> to vector<16x8xbf16>
    %212 = vector.shape_cast %211 : vector<16x8xbf16> to vector<1x16x8xbf16>
    "tpu.trace_start"() <{level = 10 : i32, message = "bqd,bkd->bqk"}> : () -> ()
    %cst_65 = arith.constant dense<0.000000e+00> : vector<1x8x16xf32>
    %213 = tpu.matmul %208, %210, %cst_65 {dimension_numbers = #tpu.dot_dimension_numbers<[2], [2], [1], [1], [0, 0, 0, 1, 1, 1], [0], [0]>} : vector<1x8x8xbf16>, vector<1x16x8xbf16>, vector<1x8x16xf32> -> vector<1x8x16xf32>
    "tpu.trace_stop"() : () -> ()
    %214 = arith.addf %213, %18 : vector<1x8x16xf32>
    %cst_66 = arith.constant dense<0xFF800000> : vector<1x8xf32>
    %215 = vector.multi_reduction <maximumf>, %214, %cst_66 [2] : vector<1x8x16xf32> to vector<1x8xf32>
    %216 = vector.shape_cast %215 : vector<1x8xf32> to vector<1x8x1xf32>
    %217 = vector.broadcast %216 : vector<1x8x1xf32> to vector<1x8x16xf32>
    %218 = arith.subf %214, %217 : vector<1x8x16xf32>
    %219 = math.exp %218 : vector<1x8x16xf32>
    %cst_67 = arith.constant dense<0.000000e+00> : vector<1x8xf32>
    %220 = vector.multi_reduction <add>, %219, %cst_67 [2] : vector<1x8x16xf32> to vector<1x8xf32>
    %221 = vector.shape_cast %220 : vector<1x8xf32> to vector<1x8x1xf32>
    %222 = tpu.reciprocal %221 {approx = true} : vector<1x8x1xf32> -> vector<1x8x1xf32>
    %223 = vector.broadcast %222 : vector<1x8x1xf32> to vector<1x8x16xf32>
    %224 = arith.mulf %219, %223 : vector<1x8x16xf32>
    %225 = arith.truncf %224 : vector<1x8x16xf32> to vector<1x8x16xbf16>
    "tpu.trace_start"() <{level = 10 : i32, message = "bqk,bkd->bqd"}> : () -> ()
    %cst_68 = arith.constant dense<0.000000e+00> : vector<1x8x8xf32>
    %226 = tpu.matmul %225, %212, %cst_68 {dimension_numbers = #tpu.dot_dimension_numbers<[2], [1], [1], [2], [0, 0, 0, 1, 1, 2], [0], [0]>} : vector<1x8x16xbf16>, vector<1x16x8xbf16>, vector<1x8x8xf32> -> vector<1x8x8xf32>
    "tpu.trace_stop"() : () -> ()
    %227 = tpu.concatenate %166, %186, %206, %226 in 2 : vector<1x8x8xf32>, vector<1x8x8xf32>, vector<1x8x8xf32>, vector<1x8x8xf32> -> vector<1x8x32xf32>
    %228 = vector.shape_cast %227 : vector<1x8x32xf32> to vector<8x32xf32>
    %229 = arith.truncf %228 : vector<8x32xf32> to vector<8x32xbf16>
    %c0_69 = arith.constant 0 : index
    %c0_70 = arith.constant 0 : index
    %230 = vector.load %arg11[%c0_69, %c0_70] : memref<32x32xbf16, #tpu.memory_space<vmem>>, vector<32x32xbf16>
    %cst_71 = arith.constant dense<0.000000e+00> : vector<8x32xf32>
    %231 = tpu.matmul %229, %230, %cst_71 {dimension_numbers = #tpu.dot_dimension_numbers<[1], [0], [0], [1], [0, 0, 1, 1], [], []>} : vector<8x32xbf16>, vector<32x32xbf16>, vector<8x32xf32> -> vector<8x32xf32>
    %232 = arith.addf %136, %231 : vector<8x32xf32>
    %c0_72 = arith.constant 0 : index
    %c0_73 = arith.constant 0 : index
    %233 = vector.load %arg12[%c0_72, %c0_73] : memref<1x32xf32, #tpu.memory_space<vmem>>, vector<1x32xf32>
    %c0_74 = arith.constant 0 : index
    %c0_75 = arith.constant 0 : index
    %234 = vector.load %arg13[%c0_74, %c0_75] : memref<1x32xf32, #tpu.memory_space<vmem>>, vector<1x32xf32>
    %cst_76 = arith.constant dense<0.000000e+00> : vector<8xf32>
    %235 = vector.multi_reduction <add>, %232, %cst_76 [1] : vector<8x32xf32> to vector<8xf32>
    %236 = vector.shape_cast %235 : vector<8xf32> to vector<8x1xf32>
    %cst_77 = arith.constant 3.200000e+01 : f32
    %237 = vector.broadcast %cst_77 : f32 to vector<8x1xf32>
    %238 = arith.divf %236, %237 : vector<8x1xf32>
    %239 = vector.broadcast %238 : vector<8x1xf32> to vector<8x32xf32>
    %240 = arith.subf %232, %239 : vector<8x32xf32>
    %241 = arith.mulf %240, %240 : vector<8x32xf32>
    %cst_78 = arith.constant dense<0.000000e+00> : vector<8xf32>
    %242 = vector.multi_reduction <add>, %241, %cst_78 [1] : vector<8x32xf32> to vector<8xf32>
    %243 = vector.shape_cast %242 : vector<8xf32> to vector<8x1xf32>
    %cst_79 = arith.constant 3.200000e+01 : f32
    %244 = vector.broadcast %cst_79 : f32 to vector<8x1xf32>
    %245 = arith.divf %243, %244 : vector<8x1xf32>
    %246 = vector.broadcast %238 : vector<8x1xf32> to vector<8x32xf32>
    %247 = arith.subf %232, %246 : vector<8x32xf32>
    %cst_80 = arith.constant 9.99999974E-6 : f32
    %248 = vector.broadcast %cst_80 : f32 to vector<8x1xf32>
    %249 = arith.addf %245, %248 : vector<8x1xf32>
    %250 = math.rsqrt %249 : vector<8x1xf32>
    %251 = vector.broadcast %250 : vector<8x1xf32> to vector<8x32xf32>
    %252 = arith.mulf %247, %251 : vector<8x32xf32>
    %253 = vector.broadcast %233 : vector<1x32xf32> to vector<8x32xf32>
    %254 = arith.mulf %252, %253 : vector<8x32xf32>
    %255 = vector.broadcast %234 : vector<1x32xf32> to vector<8x32xf32>
    %256 = arith.addf %254, %255 : vector<8x32xf32>
    %257 = arith.truncf %256 : vector<8x32xf32> to vector<8x32xbf16>
    %c0_81 = arith.constant 0 : index
    %c0_82 = arith.constant 0 : index
    %258 = vector.load %arg14[%c0_81, %c0_82] : memref<32x64xbf16, #tpu.memory_space<vmem>>, vector<32x64xbf16>
    %cst_83 = arith.constant dense<0.000000e+00> : vector<8x64xf32>
    %259 = tpu.matmul %257, %258, %cst_83 {dimension_numbers = #tpu.dot_dimension_numbers<[1], [0], [0], [1], [0, 0, 1, 1], [], []>} : vector<8x32xbf16>, vector<32x64xbf16>, vector<8x64xf32> -> vector<8x64xf32>
    %c0_84 = arith.constant 0 : index
    %c0_85 = arith.constant 0 : index
    %260 = vector.load %arg15[%c0_84, %c0_85] : memref<1x64xf32, #tpu.memory_space<vmem>>, vector<1x64xf32>
    %261 = vector.broadcast %260 : vector<1x64xf32> to vector<8x64xf32>
    %262 = arith.addf %259, %261 : vector<8x64xf32>
    %cst_86 = arith.constant 0.000000e+00 : f32
    %263 = vector.broadcast %cst_86 : f32 to vector<8x64xf32>
    %264 = arith.maximumf %262, %263 : vector<8x64xf32>
    %265 = arith.truncf %264 : vector<8x64xf32> to vector<8x64xbf16>
    %c0_87 = arith.constant 0 : index
    %c0_88 = arith.constant 0 : index
    %266 = vector.load %arg16[%c0_87, %c0_88] : memref<64x32xbf16, #tpu.memory_space<vmem>>, vector<64x32xbf16>
    %cst_89 = arith.constant dense<0.000000e+00> : vector<8x32xf32>
    %267 = tpu.matmul %265, %266, %cst_89 {dimension_numbers = #tpu.dot_dimension_numbers<[1], [0], [0], [1], [0, 0, 1, 1], [], []>} : vector<8x64xbf16>, vector<64x32xbf16>, vector<8x32xf32> -> vector<8x32xf32>
    %c0_90 = arith.constant 0 : index
    %c0_91 = arith.constant 0 : index
    %268 = vector.load %arg17[%c0_90, %c0_91] : memref<1x32xf32, #tpu.memory_space<vmem>>, vector<1x32xf32>
    %269 = vector.broadcast %268 : vector<1x32xf32> to vector<8x32xf32>
    %270 = arith.addf %267, %269 : vector<8x32xf32>
    %271 = arith.addf %256, %270 : vector<8x32xf32>
    %c0_92 = arith.constant 0 : index
    %c0_93 = arith.constant 0 : index
    %272 = vector.load %arg18[%c0_92, %c0_93] : memref<1x32xf32, #tpu.memory_space<vmem>>, vector<1x32xf32>
    %c0_94 = arith.constant 0 : index
    %c0_95 = arith.constant 0 : index
    %273 = vector.load %arg19[%c0_94, %c0_95] : memref<1x32xf32, #tpu.memory_space<vmem>>, vector<1x32xf32>
    %cst_96 = arith.constant dense<0.000000e+00> : vector<8xf32>
    %274 = vector.multi_reduction <add>, %271, %cst_96 [1] : vector<8x32xf32> to vector<8xf32>
    %275 = vector.shape_cast %274 : vector<8xf32> to vector<8x1xf32>
    %cst_97 = arith.constant 3.200000e+01 : f32
    %276 = vector.broadcast %cst_97 : f32 to vector<8x1xf32>
    %277 = arith.divf %275, %276 : vector<8x1xf32>
    %278 = vector.broadcast %277 : vector<8x1xf32> to vector<8x32xf32>
    %279 = arith.subf %271, %278 : vector<8x32xf32>
    %280 = arith.mulf %279, %279 : vector<8x32xf32>
    %cst_98 = arith.constant dense<0.000000e+00> : vector<8xf32>
    %281 = vector.multi_reduction <add>, %280, %cst_98 [1] : vector<8x32xf32> to vector<8xf32>
    %282 = vector.shape_cast %281 : vector<8xf32> to vector<8x1xf32>
    %cst_99 = arith.constant 3.200000e+01 : f32
    %283 = vector.broadcast %cst_99 : f32 to vector<8x1xf32>
    %284 = arith.divf %282, %283 : vector<8x1xf32>
    %285 = vector.broadcast %277 : vector<8x1xf32> to vector<8x32xf32>
    %286 = arith.subf %271, %285 : vector<8x32xf32>
    %cst_100 = arith.constant 9.99999974E-6 : f32
    %287 = vector.broadcast %cst_100 : f32 to vector<8x1xf32>
    %288 = arith.addf %284, %287 : vector<8x1xf32>
    %289 = math.rsqrt %288 : vector<8x1xf32>
    %290 = vector.broadcast %289 : vector<8x1xf32> to vector<8x32xf32>
    %291 = arith.mulf %286, %290 : vector<8x32xf32>
    %292 = vector.broadcast %272 : vector<1x32xf32> to vector<8x32xf32>
    %293 = arith.mulf %291, %292 : vector<8x32xf32>
    %294 = vector.broadcast %273 : vector<1x32xf32> to vector<8x32xf32>
    %295 = arith.addf %293, %294 : vector<8x32xf32>
    %296 = vector.shape_cast %295 : vector<8x32xf32> to vector<1x8x32xf32>
    %297 = arith.truncf %296 : vector<1x8x32xf32> to vector<1x8x32xbf16>
    %c0_101 = arith.constant 0 : index
    %c0_102 = arith.constant 0 : index
    %c0_103 = arith.constant 0 : index
    %298 = vector.load %arg20[%c0_101, %c0_102, %c0_103] : memref<1x8x32xbf16, #tpu.memory_space<vmem>>, vector<1x8x32xbf16>
    tpu.vector_store %arg20[%c0_101, %c0_102, %c0_103], %297 {strides = array<i32>} : memref<1x8x32xbf16, #tpu.memory_space<vmem>>, vector<1x8x32xbf16>,
    return
  }
  func.func @transform_0(%arg0: i32) -> (i32, i32, i32) {
    %c0_i32 = arith.constant 0 : i32
    %c0_i32_0 = arith.constant 0 : i32
    %c0_i32_1 = arith.constant 0 : i32
    return %arg0, %c0_i32, %c0_i32_0 : i32, i32, i32
  }
  func.func @transform_1(%arg0: i32) -> (i32, i32, i32) {
    %c0_i32 = arith.constant 0 : i32
    %c0_i32_0 = arith.constant 0 : i32
    %c0_i32_1 = arith.constant 0 : i32
    return %arg0, %c0_i32, %c0_i32_0 : i32, i32, i32
  }
  func.func @transform_2(%arg0: i32) -> (i32, i32, i32) {
    %c0_i32 = arith.constant 0 : i32
    %c0_i32_0 = arith.constant 0 : i32
    %c0_i32_1 = arith.constant 0 : i32
    return %arg0, %c0_i32, %c0_i32_0 : i32, i32, i32
  }
  func.func @transform_3(%arg0: i32) -> (i32, i32, i32) {
    %c0_i32 = arith.constant 0 : i32
    %c0_i32_0 = arith.constant 0 : i32
    %c0_i32_1 = arith.constant 0 : i32
    return %arg0, %c0_i32, %c0_i32_0 : i32, i32, i32
  }
  func.func @transform_4(%arg0: i32) -> (i32, i32) {
    %c0_i32 = arith.constant 0 : i32
    %c0_i32_0 = arith.constant 0 : i32
    %c0_i32_1 = arith.constant 0 : i32
    return %c0_i32, %c0_i32_0 : i32, i32
  }
  func.func @transform_5(%arg0: i32) -> (i32, i32) {
    %c0_i32 = arith.constant 0 : i32
    %c0_i32_0 = arith.constant 0 : i32
    %c0_i32_1 = arith.constant 0 : i32
    return %c0_i32, %c0_i32_0 : i32, i32
  }
  func.func @transform_6(%arg0: i32) -> (i32, i32) {
    %c0_i32 = arith.constant 0 : i32
    %c0_i32_0 = arith.constant 0 : i32
    %c0_i32_1 = arith.constant 0 : i32
    return %c0_i32, %c0_i32_0 : i32, i32
  }
  func.func @transform_7(%arg0: i32) -> (i32, i32) {
    %c0_i32 = arith.constant 0 : i32
    %c0_i32_0 = arith.constant 0 : i32
    %c0_i32_1 = arith.constant 0 : i32
    return %c0_i32, %c0_i32_0 : i32, i32
  }
  func.func @transform_8(%arg0: i32) -> (i32, i32) {
    %c0_i32 = arith.constant 0 : i32
    %c0_i32_0 = arith.constant 0 : i32
    %c0_i32_1 = arith.constant 0 : i32
    return %c0_i32, %c0_i32_0 : i32, i32
  }
  func.func @transform_9(%arg0: i32) -> (i32, i32) {
    %c0_i32 = arith.constant 0 : i32
    %c0_i32_0 = arith.constant 0 : i32
    %c0_i32_1 = arith.constant 0 : i32
    return %c0_i32, %c0_i32_0 : i32, i32
  }
  func.func @transform_10(%arg0: i32) -> (i32, i32) {
    %c0_i32 = arith.constant 0 : i32
    %c0_i32_0 = arith.constant 0 : i32
    %c0_i32_1 = arith.constant 0 : i32
    return %c0_i32, %c0_i32_0 : i32, i32
  }
  func.func @transform_11(%arg0: i32) -> (i32, i32) {
    %c0_i32 = arith.constant 0 : i32
    %c0_i32_0 = arith.constant 0 : i32
    %c0_i32_1 = arith.constant 0 : i32
    return %c0_i32, %c0_i32_0 : i32, i32
  }
  func.func @transform_12(%arg0: i32) -> (i32, i32) {
    %c0_i32 = arith.constant 0 : i32
    %c0_i32_0 = arith.constant 0 : i32
    %c0_i32_1 = arith.constant 0 : i32
    return %c0_i32, %c0_i32_0 : i32, i32
  }
  func.func @transform_13(%arg0: i32) -> (i32, i32) {
    %c0_i32 = arith.constant 0 : i32
    %c0_i32_0 = arith.constant 0 : i32
    %c0_i32_1 = arith.constant 0 : i32
    return %c0_i32, %c0_i32_0 : i32, i32
  }
  func.func @transform_14(%arg0: i32) -> (i32, i32) {
    %c0_i32 = arith.constant 0 : i32
    %c0_i32_0 = arith.constant 0 : i32
    %c0_i32_1 = arith.constant 0 : i32
    return %c0_i32, %c0_i32_0 : i32, i32
  }
  func.func @transform_15(%arg0: i32) -> (i32, i32) {
    %c0_i32 = arith.constant 0 : i32
    %c0_i32_0 = arith.constant 0 : i32
    %c0_i32_1 = arith.constant 0 : i32
    return %c0_i32, %c0_i32_0 : i32, i32
  }
  func.func @transform_16(%arg0: i32) -> (i32, i32) {
    %c0_i32 = arith.constant 0 : i32
    %c0_i32_0 = arith.constant 0 : i32
    %c0_i32_1 = arith.constant 0 : i32
    return %c0_i32, %c0_i32_0 : i32, i32
  }
  func.func @transform_17(%arg0: i32) -> (i32, i32) {
    %c0_i32 = arith.constant 0 : i32
    %c0_i32_0 = arith.constant 0 : i32
    %c0_i32_1 = arith.constant 0 : i32
    return %c0_i32, %c0_i32_0 : i32, i32
  }
  func.func @transform_18(%arg0: i32) -> (i32, i32) {
    %c0_i32 = arith.constant 0 : i32
    %c0_i32_0 = arith.constant 0 : i32
    %c0_i32_1 = arith.constant 0 : i32
    return %c0_i32, %c0_i32_0 : i32, i32
  }
  func.func @transform_19(%arg0: i32) -> (i32, i32, i32) {
    %c0_i32 = arith.constant 0 : i32
    %c0_i32_0 = arith.constant 0 : i32
    %c0_i32_1 = arith.constant 0 : i32
    return %arg0, %c0_i32, %c0_i32_0 : i32, i32, i32
  }
}

</mosaic_0001>

<bundles_post_ra>
// kernel: tpu_custom_call.1
= control target key start
LH: loop header
LB: loop body
LE: loop exit
PB: predicated region body
PF: predicated region fallthrough
CT: control target
= control target key end

     0   :  { %s3977_s0 = inlined_call_operand.hbm [shape: bf16[2,8,32], index: 0, kind: input, shape index: {}]   ;;  %s3978_s1 = inlined_call_operand.vmem [shape: bf16[2,16,32], index: 1, kind: input, shape index: {}]   ;;  %s3979_s2 = inlined_call_operand.hbm [shape: s8[2,8,8], index: 2, kind: input, shape index: {}]   ;;  %s3980_s3 = inlined_call_operand.hbm [shape: s8[2,8,16], index: 3, kind: input, shape index: {}]   ;;  %s3981_s4 = inlined_call_operand.vmem [shape: bf16[32,96], index: 4, kind: input, shape index: {}]   ;;  %s3982_s5 = inlined_call_operand.vmem [shape: bf16[32,32], index: 5, kind: input, shape index: {}]   ;;  %s3983_s6 = inlined_call_operand.vmem [shape: f32[1,32], index: 6, kind: input, shape index: {}]   ;;  %s3984_s7 = inlined_call_operand.hbm [shape: f32[1,32], index: 7, kind: input, shape index: {}]   ;;  %s3985_s8 = inlined_call_operand.hbm [shape: bf16[32,32], index: 8, kind: input, shape index: {}]   ;;  %s3986_s9 = inlined_call_operand.vmem [shape: bf16[32,64], index: 9, kind: input, shape index: {}]   ;;  %s3987_s10 = inlined_call_operand.hbm [shape: bf16[32,32], index: 10, kind: input, shape index: {}]   ;;  %s3988_s11 = inlined_call_operand.hbm [shape: f32[1,32], index: 11, kind: input, shape index: {}]   ;;  %s3989_s12 = inlined_call_operand.hbm [shape: f32[1,32], index: 12, kind: input, shape index: {}]   ;;  %s3990_s13 = inlined_call_operand.vmem [shape: bf16[32,64], index: 13, kind: input, shape index: {}]   ;;  %s3991_s14 = inlined_call_operand.vmem [shape: f32[1,64], index: 14, kind: input, shape index: {}]   ;;  %s3992_s15 = inlined_call_operand.vmem [shape: bf16[64,32], index: 15, kind: input, shape index: {}]   ;;  %s3993_s16 = inlined_call_operand.vmem [shape: f32[1,32], index: 16, kind: input, shape index: {}]   ;;  %s3994_s17 = inlined_call_operand.vmem [shape: f32[1,32], index: 17, kind: input, shape index: {}]   ;;  %s3995_s18 = inlined_call_operand.vmem [shape: f32[1,32], index: 18, kind: input, shape index: {}]   ;;  %s3996_s19 = inlined_call_operand.hbm [shape: bf16[2,8,32], index: 19, kind: output, shape index: {}]  }
   0x1   :  { %4030 = sst [smem:[#allocation29_spill]] %s3977_s0 }
   0x2   :  { %4031 = sst [smem:[#allocation30_spill]] %s3978_s1 }
   0x3   :  { %4032 = sst [smem:[#allocation31_spill]] %s3979_s2 }
   0x4   :  { %4033 = sst [smem:[#allocation32_spill]] %s3980_s3 }
   0x5   :  { %4034 = sst [smem:[#allocation33_spill]] %s3982_s5 }
   0x6   :  { %4035 = sst [smem:[#allocation34_spill]] %s3983_s6 }
   0x7   :  { %4036 = sst [smem:[#allocation35_spill]] %s3984_s7 }
   0x8   :  { %4037 = sst [smem:[#allocation36_spill]] %s3986_s9 }
   0x9   :  { %4038 = sst [smem:[#allocation37_spill]] %s3987_s10 }
   0xa   :  { %4039 = sst [smem:[#allocation38_spill]] %s3990_s13 }
   0xb   :  { %4040 = sst [smem:[#allocation39_spill]] %s3991_s14 }
   0xc   :  { %4041 = sst [smem:[#allocation40_spill]] %s3992_s15 }
   0xd   :  { %4042 = sst [smem:[#allocation41_spill]] %s3993_s16 }
   0xe   :  { %4043 = sst [smem:[#allocation42_spill]] %s3994_s17 }
   0xf   :  { %4044 = sst [smem:[#allocation43_spill]] %s3995_s18 }
  0x10   :  { %4045 = sst [smem:[#allocation44_spill]] %s3996_s19 }
  0x11   :  { %24 = vsyncpa [#allocation3], 0 }
  0x12   :  { %26 = vsyncpa [#allocation3 + $0x1], 0 }
  0x13   :  { %27 = vsyncpa [#allocation6], 0 }
  0x14   :  { %29 = vsyncpa [#allocation6 + $0x1], 0 }
  0x15   :  { %30 = vsyncpa [#allocation9], 0 }
  0x16   :  { %31 = vsyncpa [#allocation12], 0 }
  0x17   :  { %32 = vsyncpa [#allocation15], 0 }
  0x18   :  { %33 = vsyncpa [#allocation4], 0 }
  0x19   :  { %35 = vsyncpa [#allocation4 + $0x1], 0  ;;  %s3346_s0 = smov 0   ;;  %s3348_s30 = smov 0  }
  0x1a   :  { %s3350_s20 = smov 0   ;;  %s3352_s21 = smov 0  }
  0x1b LB: > { %4046 = sst [smem:[#allocation23_spill]] %s3205_s0  ;;  %s3219_s1 = smov [#allocation8]   ;;  %s3217_s21 = sphi %s3352_s21, %s4102_s21   ;;  %s3213_s20 = sphi %s3350_s20, %s4104_s20   ;;  %s3209_s30 = sphi %s3348_s30, %s4106_s30   ;;  %s3205_s0 = sphi %s3346_s0, %s4105_s0  }
  0x1c   : > { %4047 = sst [smem:[#allocation24_spill]] %s3213_s20  ;;  %s513_s22 = sshll.u32 %s3219_s1, 4  ;;  %s514_s22 = int_to_ptr.vmem [resolvable:$true] %s513_s22 }
  0x1d   : > { %s3367_s2 = sadd.s32 4294967295, %s3217_s21   ;;  %p2436_p0 = scmp.ge.s32.totalorder %s3217_s21, 1 }
  0x1e   : > { %p4001_p1 = scmp.eq.s32.totalorder %s3367_s2, 0  ;;  %p491_p2 = scmp.lt.s32.totalorder %s3217_s21, 3 }
  0x1f   : > { %s3220_s24 = smov [#allocation11]   ;;  %s4050_s7 = sld [smem:[#allocation35_spill]] }
  0x20   : > { %p3372_p3 = pnand %p2436_p0, %p491_p2  ;;  %s539_s25 = sshll.u32 %s3220_s24, 4  ;;  %s3385_s25 = int_to_ptr.vmem [resolvable:$true] %s539_s25 }
  0x22   : > { %s4048_s23 = scalar_select %p3372_p3, 1, 0 }
  0x23   : > { %p2753_p5 = pneg %p3372_p3 }
  0x25   : > { %p3381_p6 = pnand %p2753_p5, %p4001_p1  ;;  %s2905_s28 = scalar_lea.hbm %s4050_s7, 16 }
  0x26   : > { %p2906_p7 = scmp.ne.s32.totalorder %s4050_s7, %s2905_s28  ;;  %p2912_p11 = scmp.lt.u32.totalorder %s2905_s28, %s4050_s7 }
  0x27   : > { %s4049_s3 = scalar_select %p3381_p6, 1, 0 }
  0x28   : > { %p3395_p8 = pneg %p3381_p6 }
  0x2a   : > { %s4051_s19 = scalar_select %p3395_p8, 1, 0 }
  0x2b   : > { %p2908_p9 = pnand %p3395_p8, %p2906_p7 }
  0x2d   : > { %p2909_p10 = pneg %p2908_p9 }
  0x2f   : > { %p2914_p12 = pnand %p2912_p11, %p2909_p10 }
  0x31   : > { %2917 = shalt.err (!%p2914_p12)
}
  0x32   : > { %s2918_s26 = scalar_lea.vmem %s514_s22, 16  ;;  %s2925_s27 = scalar_lea.vmem %s514_s22, 32 }
  0x33   : > { %p2919_p13 = scmp.ne.s32.totalorder %s514_s22, %s2918_s26  ;;  %p2926_p5 = scmp.lt.s32.totalorder %s514_s22, %s514_s22 }
  0x34   : > { %p2927_p4 = scmp.lt.s32.totalorder %s2925_s27, %s2918_s26 }
  0x35   : > { %p2921_p0 = pnand %p2919_p13, %p3395_p8 }
  0x36   : > { %p2928_p1 = por %p2927_p4, %p2926_p5 }
  0x37   : > { %p2922_p2 = pneg %p2921_p0 }
  0x39   : > { %p2929_p3 = pnand %p2928_p1, %p2922_p2 }
  0x3b   : > { %2932 = shalt.err (!%p2929_p3)
}
  0x3c   : > { %2756 = dma.hbm_to_vmem [thread:$0]  (!%p3381_p6), %s4050_s7, 16, %s514_s22, [#allocation9]  }
  0x3d   : > { %s4052_s10 = sld [smem:[#allocation37_spill]] }
  0x43   : > { %s2933_s24 = scalar_lea.hbm %s4052_s10, 256 }
  0x44   : > { %p2934_p7 = scmp.ne.s32.totalorder %s4052_s10, %s2933_s24  ;;  %p2940_p1 = scmp.lt.u32.totalorder %s2933_s24, %s4052_s10 }
  0x46   : > { %p2936_p9 = pnand %p2934_p7, %p3395_p8 }
  0x48   : > { %p2937_p4 = pneg %p2936_p9 }
  0x4a   : > { %p2942_p3 = pnand %p2940_p1, %p2937_p4 }
  0x4c   : > { %2945 = shalt.err (!%p2942_p3)
}
  0x4d   : > { %s2946_s22 = scalar_lea.vmem %s3385_s25, 256  ;;  %p2954_p13 = scmp.lt.s32.totalorder %s3385_s25, %s3385_s25 }
  0x4e   : > { %p2947_p10 = scmp.ne.s32.totalorder %s3385_s25, %s2946_s22  ;;  %p2955_p0 = scmp.lt.s32.totalorder %s2946_s22, %s2946_s22 }
  0x50   : > { %p2949_p11 = pnand %p2947_p10, %p3395_p8  ;;  %p2956_p2 = por %p2955_p0, %p2954_p13 }
  0x52   : > { %p2950_p12 = pneg %p2949_p11 }
  0x54   : > { %p2957_p5 = pnand %p2956_p2, %p2950_p12 }
  0x56   : > { %2960 = shalt.err (!%p2957_p5)
}
  0x57   : > { %s4003_s16 = smov 64   ;;  %s4004_s17 = smov 4  }
  0x58   : > { %2762 = dma.hbm_to_vmem [thread:$0]  (!%p3381_p6), %s4052_s10, 256, %s3385_s25, [#allocation12], %s4003_s16, %s4003_s16, %s4004_s17  }
  0x59   : > { %s2435_s18 = sadd.s32 4294967294, %s3217_s21   ;;  %s3439_s28 = sadd.s32 1, %s3217_s21  }
  0x5a   : > { %4053 = sst [smem:[#allocation25_spill]] %s3439_s28  ;;  %s45_s24 = ssub.s32 %s3217_s21, %s3439_s28 }
  0x5b   : > { %s48_s26 = sadd.s32 1, %s3213_s20  ;;  %p46_p7 = scmp.eq.s32.totalorder %s45_s24, 0 }
  0x5c   : > { %p55_p9 = scmp.ne.s32.totalorder %s3213_s20, %s3209_s30  ;;  %p56_p4 = scmp.eq.s32.totalorder %s3217_s21, 0 }
  0x5d   : > { %p61_p1 = scmp.ne.s32.totalorder %s3209_s30, %s3205_s0  ;;  %p4055_p10 = scmp.eq.s32.totalorder %s3367_s2, 0 }
  0x5e   : > { %s3450_s27 = scalar_select %p46_p7, %s3213_s20, %s48_s26  }
  0x5f   : > { %p57_p3 = por %p56_p4, %p55_p9  ;;  %p3454_p11 = por %p4055_p10, %p61_p1 }
  0x60   : > { %4054 = sst [smem:[#allocation26_spill]] %s3450_s27  ;;  %p478_p12 = scmp.eq.s32.totalorder %s3367_s2, 1 }
  0x61   : > { %s4056_s22 = scalar_select %p3454_p11, 1, 0 }
  0x62   : > { %p484_p13 = scmp.eq.s32.totalorder %s2435_s18, 1  ;;  %p2788_p0 = scmp.lt.s32.totalorder %s3217_s21, 2 }
  0x63   : > { %s3461_s25 = sand.u32 1, %s3213_s20   ;;  %p3463_p2 = por %p478_p12, %p55_p9 }
  0x64   : > { %p3467_p5 = por %p484_p13, %p61_p1  ;;  %p3471_p7 = pnand %p2788_p0, %p57_p3 }
  0x65   : > { %s4057_s29 = scalar_select %p3463_p2, 1, 0 }
  0x66   : > { %s4059_s1 = scalar_select %p3467_p5, 1, 0 }
  0x67   : > { %4058 = sst [smem:[#allocation27_spill]] %s4057_s29  ;;  %s619_s26 = sand.u32 1, %s3217_s21  }
  0x68   : > { %4060 = sst [smem:[#allocation28_spill]] %s4059_s1  ;;  %s4012_s18 = sshll.u32 %s3461_s25, 1 }
  0x69   : > { %s4061_s24 = scalar_select %p3471_p7, 1, 0 }
  0x6a   : > { %s4013_s16 = sshll.u32 %s3217_s21, 5  ;;  %s623_s17 = scalar_lea.vmem [#allocation5], %s4012_s18 }
  0x6b   : > { %s630_s7 = sshll.u32 %s623_s17, 4  ;;  %s4062_s20 = sld [smem:[#allocation31_spill]]  ;;  %s3487_s7 = int_to_ptr.vmem [resolvable:$true] %s630_s7 }
  0x6c   : > { %s3489_s1 = scalar_lea.sflag [#allocation6], %s619_s26  ;;  %p3495_p4 = pneg %p3471_p7 }
  0x6e   : > { %s4064_s18 = scalar_select %p3495_p4, 1, 0 }
  0x71   : > { %s4063_s28 = smov %s4062_s20  ;;  %s3485_s0 = scalar_lea.hbm %s4062_s20, %s4013_s16 }
  0x72   : > { %s2961_s29 = scalar_lea.hbm %s3485_s0, 32  ;;  %s2966_s17 = scalar_lea.hbm %s4063_s28, 64 }
  0x73   : > { %p2962_p9 = scmp.ne.s32.totalorder %s3485_s0, %s2961_s29  ;;  %p2967_p10 = scmp.lt.u32.totalorder %s3485_s0, %s4063_s28 }
  0x74   : > { %p2968_p12 = scmp.lt.u32.totalorder %s2966_s17, %s2961_s29  ;;  %p2970_p0 = scmp.lt.u32.totalorder %s2961_s29, %s3485_s0 }
  0x75   : > { %p2964_p1 = pnand %p3495_p4, %p2962_p9 }
  0x76   : > { %p2969_p13 = por %p2968_p12, %p2967_p10 }
  0x77   : > { %p2965_p3 = pneg %p2964_p1 }
  0x78   : > { %p2971_p5 = por %p2970_p0, %p2969_p13 }
  0x7a   : > { %p2972_p2 = pnand %p2971_p5, %p2965_p3 }
  0x7c   : > { %2975 = shalt.err (!%p2972_p2)
}
  0x7d   : > { %s2976_s26 = scalar_lea.vmem %s3487_s7, 32  ;;  %s3223_s10 = smov [#allocation5]  }
  0x7e   : > { %p2977_p9 = scmp.ne.s32.totalorder %s3487_s7, %s2976_s26  ;;  %s2981_s20 = sshll.u32 %s3223_s10, 4  ;;  %s2982_s20 = int_to_ptr.vmem [resolvable:$false] %s2981_s20 }
  0x7f   : > { %s2983_s16 = scalar_lea.vmem %s2982_s20, 64  ;;  %p2984_p6 = scmp.lt.s32.totalorder %s3487_s7, %s2982_s20 }
  0x80   : > { %p2979_p1 = pnand %p2977_p9, %p3495_p4  ;;  %p2985_p8 = scmp.lt.s32.totalorder %s2983_s16, %s2976_s26 }
  0x82   : > { %p2980_p11 = pneg %p2979_p1  ;;  %p2986_p10 = por %p2985_p8, %p2984_p6 }
  0x84   : > { %p2987_p12 = pnand %p2986_p10, %p2980_p11 }
  0x86   : > { %2990 = shalt.err (!%p2987_p12)
}
  0x87   : > { %2775 = dma.hbm_to_vmem [thread:$0]  (!%p3471_p7), %s3485_s0, 32, %s3487_s7, %s3489_s1  }
  0x88   : > { %s4065_s29 = sshll.u32 %s3217_s21, 5  ;;  %s4066_s28 = sld [smem:[#allocation32_spill]] }
  0x89   : > { %s3224_s14 = smov [#allocation10]   ;;  %s3225_s26 = smov [#allocation13]  }
  0x8a   : > { %s523_s20 = sshll.u32 %s3224_s14, 4  ;;  %s553_s16 = sshll.u32 %s3225_s26, 4  ;;  %s524_s20 = int_to_ptr.vmem [resolvable:$true] %s523_s20  ;;  %s3526_s16 = int_to_ptr.vmem [resolvable:$true] %s553_s16 }
  0x8b   : > { %s2991_s6 = scalar_lea.hbm %s3985_s8, 256  ;;  %p4067_p8 = scmp.ne.s32.totalorder %s4051_s19, 0 }
  0x8c   : > { %p2992_p6 = scmp.ne.s32.totalorder %s3985_s8, %s2991_s6  ;;  %p2998_p5 = scmp.lt.u32.totalorder %s2991_s6, %s3985_s8 }
  0x8e   : > { %s3524_s10 = scalar_lea.hbm %s4066_s28, %s4065_s29  ;;  %p2994_p11 = pnand %p2992_p6, %p4067_p8 }
  0x90   : > { %p2995_p2 = pneg %p2994_p11 }
  0x92   : > { %p3000_p3 = pnand %p2998_p5, %p2995_p2 }
  0x94   : > { %3003 = shalt.err (!%p3000_p3)
}
  0x95   : > { %s3004_s14 = scalar_lea.vmem %s524_s20, 256  ;;  %p3012_p1 = scmp.lt.s32.totalorder %s524_s20, %s524_s20 }
  0x96   : > { %p3005_p13 = scmp.ne.s32.totalorder %s524_s20, %s3004_s14  ;;  %p3013_p10 = scmp.lt.s32.totalorder %s3004_s14, %s3004_s14 }
  0x98   : > { %p3007_p0 = pnand %p3005_p13, %p4067_p8  ;;  %p3014_p12 = por %p3013_p10, %p3012_p1 }
  0x9a   : > { %p3008_p9 = pneg %p3007_p0 }
  0x9c   : > { %p3015_p7 = pnand %p3014_p12, %p3008_p9 }
  0x9e   : > { %3018 = shalt.err (!%p3015_p7)
}
  0x9f   : > { %p4068_p6 = scmp.ne.s32.totalorder %s4049_s3, 0  ;;  %s4069_s5 = smov 4  }
  0xa0   : > { %s4070_s9 = smov 64   ;;  %s3019_s17 = scalar_lea.hbm %s3988_s11, 16 }
  0xa1   : > { %2759 = dma.hbm_to_vmem [thread:$0]  (!%p4068_p6), %s3985_s8, 256, %s524_s20, [#allocation9], %s4070_s9, %s4070_s9, %s4069_s5  }
  0xa2   : > { %p3020_p11 = scmp.ne.s32.totalorder %s3988_s11, %s3019_s17  ;;  %p3026_p5 = scmp.lt.u32.totalorder %s3019_s17, %s3988_s11 }
  0xa4   : > { %p3022_p7 = pnand %p3020_p11, %p4067_p8 }
  0xa6   : > { %p3023_p2 = pneg %p3022_p7 }
  0xa8   : > { %p3028_p3 = pnand %p3026_p5, %p3023_p2 }
  0xaa   : > { %3031 = shalt.err (!%p3028_p3)
}
  0xab   : > { %s3032_s20 = scalar_lea.vmem %s3526_s16, 16  ;;  %s3039_s14 = scalar_lea.vmem %s3526_s16, 32 }
  0xac   : > { %p3033_p13 = scmp.ne.s32.totalorder %s3526_s16, %s3032_s20  ;;  %p3040_p1 = scmp.lt.s32.totalorder %s3526_s16, %s3526_s16 }
  0xad   : > { %p3041_p10 = scmp.lt.s32.totalorder %s3039_s14, %s3032_s20 }
  0xae   : > { %p3035_p0 = pnand %p3033_p13, %p4067_p8 }
  0xaf   : > { %p3042_p12 = por %p3041_p10, %p3040_p1 }
  0xb0   : > { %p3036_p9 = pneg %p3035_p0 }
  0xb2   : > { %p3043_p11 = pnand %p3042_p12, %p3036_p9 }
  0xb4   : > { %3046 = shalt.err (!%p3043_p11)
}
  0xb5   : > { %2765 = dma.hbm_to_vmem [thread:$0]  (!%p4068_p6), %s3988_s11, 16, %s3526_s16, [#allocation12]  }
  0xb6   : > { %s3226_s13 = smov [#allocation14]   ;;  %s2443_s15 = sshll.u32 %s3461_s25, 2 }
  0xb7   : > { %s564_s6 = sshll.u32 %s3226_s13, 4  ;;  %s3047_s27 = scalar_lea.hbm %s3989_s12, 16  ;;  %s565_s6 = int_to_ptr.vmem [resolvable:$true] %s564_s6 }
  0xb8   : > { %p3048_p7 = scmp.ne.s32.totalorder %s3989_s12, %s3047_s27  ;;  %p3054_p3 = scmp.lt.u32.totalorder %s3047_s27, %s3989_s12 }
  0xba   : > { %p3050_p2 = pnand %p3048_p7, %p4067_p8 }
  0xbc   : > { %p3051_p5 = pneg %p3050_p2 }
  0xbe   : > { %p3056_p13 = pnand %p3054_p3, %p3051_p5 }
  0xc0   : > { %3059 = shalt.err (!%p3056_p13)
}
  0xc1   : > { %s3060_s16 = scalar_lea.vmem %s565_s6, 16  ;;  %s3067_s14 = scalar_lea.vmem %s565_s6, 32 }
  0xc2   : > { %p3061_p0 = scmp.ne.s32.totalorder %s565_s6, %s3060_s16  ;;  %p3068_p10 = scmp.lt.s32.totalorder %s565_s6, %s565_s6 }
  0xc3   : > { %p3069_p12 = scmp.lt.s32.totalorder %s3067_s14, %s3060_s16 }
  0xc4   : > { %p3063_p9 = pnand %p3061_p0, %p4067_p8 }
  0xc5   : > { %p3070_p11 = por %p3069_p12, %p3068_p10 }
  0xc6   : > { %p3064_p1 = pneg %p3063_p9 }
  0xc8   : > { %p3071_p4 = pnand %p3070_p11, %p3064_p1 }
  0xca   : > { %3074 = shalt.err (!%p3071_p4)
}
  0xcb   : > { %2768 = dma.hbm_to_vmem [thread:$0]  (!%p4068_p6), %s3989_s12, 16, %s565_s6, [#allocation15]  }
  0xcc   : > { %s2444_s13 = sshll.u32 %s3217_s21, 6  ;;  %s597_s29 = scalar_lea.vmem [#allocation2], %s2443_s15 }
  0xcd   : > { %s604_s19 = sshll.u32 %s597_s29, 4  ;;  %s4071_s26 = sld [smem:[#allocation29_spill]]  ;;  %s605_s19 = int_to_ptr.vmem [resolvable:$true] %s604_s19 }
  0xce   : > { %s594_s3 = scalar_lea.sflag [#allocation3], %s3461_s25  ;;  %p4072_p8 = scmp.ne.s32.totalorder %s4064_s18, 0 }
  0xd3   : > { %s3596_s7 = scalar_lea.hbm %s4071_s26, %s2444_s13  ;;  %s3080_s15 = scalar_lea.hbm %s4071_s26, 128 }
  0xd4   : > { %s3075_s0 = scalar_lea.hbm %s3596_s7, 64  ;;  %p3081_p6 = scmp.lt.u32.totalorder %s3596_s7, %s4071_s26 }
  0xd5   : > { %p3076_p4 = scmp.ne.s32.totalorder %s3596_s7, %s3075_s0  ;;  %p3082_p5 = scmp.lt.u32.totalorder %s3080_s15, %s3075_s0 }
  0xd6   : > { %p3084_p13 = scmp.lt.u32.totalorder %s3075_s0, %s3596_s7 }
  0xd7   : > { %p3078_p7 = pnand %p3076_p4, %p4072_p8  ;;  %p3083_p3 = por %p3082_p5, %p3081_p6 }
  0xd9   : > { %p3079_p2 = pneg %p3078_p7  ;;  %p3085_p0 = por %p3084_p13, %p3083_p3 }
  0xdb   : > { %p3086_p9 = pnand %p3085_p0, %p3079_p2 }
  0xdd   : > { %3089 = shalt.err (!%p3086_p9)
}
  0xde   : > { %s3090_s5 = scalar_lea.vmem %s605_s19, 64  ;;  %s3227_s9 = smov [#allocation2]  }
  0xdf   : > { %p3091_p1 = scmp.ne.s32.totalorder %s605_s19, %s3090_s5  ;;  %s3095_s13 = sshll.u32 %s3227_s9, 4  ;;  %s3096_s13 = int_to_ptr.vmem [resolvable:$false] %s3095_s13 }
  0xe0   : > { %s3097_s29 = scalar_lea.vmem %s3096_s13, 128  ;;  %p3098_p11 = scmp.lt.s32.totalorder %s605_s19, %s3096_s13 }
  0xe1   : > { %p3093_p10 = pnand %p3091_p1, %p4072_p8  ;;  %p3099_p4 = scmp.lt.s32.totalorder %s3097_s29, %s3090_s5 }
  0xe3   : > { %p3094_p12 = pneg %p3093_p10  ;;  %p3100_p7 = por %p3099_p4, %p3098_p11 }
  0xe5   : > { %p3101_p5 = pnand %p3100_p7, %p3094_p12 }
  0xe7   : > { %3104 = shalt.err (!%p3101_p5)
}
  0xe8   : > { %p4073_p6 = scmp.ne.s32.totalorder %s4061_s24, 0  ;;  %s4074_s17 = sshll.u32 %s3461_s25, 1 }
  0xe9   : > { %s641_s27 = scalar_lea.vmem [#allocation7], %s4074_s17  ;;  %s3105_s6 = scalar_lea.hbm %s3524_s10, 32 }
  0xea   : > { %2772 = dma.hbm_to_vmem [thread:$0]  (!%p4073_p6), %s3596_s7, 64, %s605_s19, %s594_s3  }
  0xeb   : > { %s648_s0 = sshll.u32 %s641_s27, 4  ;;  %p3106_p2 = scmp.ne.s32.totalorder %s3524_s10, %s3105_s6  ;;  %s649_s0 = int_to_ptr.vmem [resolvable:$true] %s648_s0 }
  0xec   : > { %s3110_s16 = scalar_lea.hbm %s4066_s28, 64  ;;  %p3111_p0 = scmp.lt.u32.totalorder %s3524_s10, %s4066_s28 }
  0xed   : > { %p3108_p3 = pnand %p3106_p2, %p4072_p8  ;;  %p3112_p9 = scmp.lt.u32.totalorder %s3110_s16, %s3105_s6 }
  0xee   : > { %p3114_p10 = scmp.lt.u32.totalorder %s3105_s6, %s3524_s10 }
  0xef   : > { %p3109_p13 = pneg %p3108_p3  ;;  %p3113_p1 = por %p3112_p9, %p3111_p0 }
  0xf1   : > { %p3115_p12 = por %p3114_p10, %p3113_p1 }
  0xf3   : > { %p3116_p11 = pnand %p3115_p12, %p3109_p13 }
  0xf5   : > { %3119 = shalt.err (!%p3116_p11)
}
  0xf6   : > { %s3120_s25 = scalar_lea.vmem %s649_s0, 32  ;;  %s3228_s19 = smov [#allocation7]  }
  0xf7   : > { %p3121_p4 = scmp.ne.s32.totalorder %s649_s0, %s3120_s25  ;;  %s3125_s7 = sshll.u32 %s3228_s19, 4  ;;  %s3126_s7 = int_to_ptr.vmem [resolvable:$false] %s3125_s7 }
  0xf8   : > { %s3127_s3 = scalar_lea.vmem %s3126_s7, 64  ;;  %p3128_p2 = scmp.lt.s32.totalorder %s649_s0, %s3126_s7 }
  0xf9   : > { %p3123_p7 = pnand %p3121_p4, %p4072_p8  ;;  %p3129_p3 = scmp.lt.s32.totalorder %s3127_s3, %s3120_s25 }
  0xfb   : > { %p3124_p5 = pneg %p3123_p7  ;;  %p3130_p6 = por %p3129_p3, %p3128_p2 }
  0xfd   : > { %p3131_p0 = pnand %p3130_p6, %p3124_p5 }
  0xff   : > { %3134 = shalt.err (!%p3131_p0)
}
 0x100   : > { %p4075_p9 = scmp.ne.s32.totalorder %s4061_s24, 0  ;;  %p4076_p13 = scmp.ne.s32.totalorder %s4048_s23, 0 }
 0x101   : > { %s3639_s18 = sand.u32 (!%p4076_p13), 1, %s3209_s30   ;;  %p4077_p8 = scmp.ne.s32.totalorder (!%p4076_p13), %s4056_s22, 0 }
 0x102   : > { %2778 = dma.hbm_to_vmem [thread:$0]  (!%p4075_p9), %s3524_s10, 32, %s649_s0, %s3489_s1  }
 0x103   : > { %657 = sbr.rel (%p4076_p13) target bundleno = 4583 (0x11e7), region = 96  ;;  %s4029_s9 = sshll.u32 (!%p4076_p13), %s3639_s18, 2 }
 0x104   : > { %s660_s13 = scalar_lea.sflag (!%p4076_p13), [#allocation3], %s3639_s18  ;;  %s663_s29 = scalar_lea.vmem (!%p4076_p13), [#allocation2], %s4029_s9 }
 0x10a   : > { %3180 = dma.done.wait (%p4077_p8), %s660_s13, 64  }
 0x10b   : > { %3182 = vsyncadd (%p4077_p8), %s660_s13, 4294967232  ;;  %s668_s23 = sand.u32 1, %s3367_s2   ;;  %s2451_s1 = sshll.u32 %s3639_s18, 1 }
 0x10c   : > { %s669_s24 = scalar_lea.sflag [#allocation6], %s668_s23  ;;  %s3651_s10 = scalar_lea.vmem [#allocation5], %s2451_s1 }
 0x10d   : > { %3184 = dma.done.wait (%p4077_p8), %s669_s24, 64  }
 0x10e   : > { %3186 = vsyncadd (%p4077_p8), %s669_s24, 4294967232  ;;  %s3657_s17 = scalar_lea.vmem [#allocation7], %s2451_s1  ;;  %p4078_p6 = scmp.eq.s32.totalorder %s3367_s2, 0 }
 0x110   : > { %3188 = dma.done.wait (%p4078_p6), [#allocation9], 272   ;;  %p4079_p1 = pmov %p4078_p6 }
 0x112   : > { %3190 = vsyncadd (%p4079_p1), [#allocation9], 4294967024  ;;  %p4080_p10 = pmov %p4079_p1 }
 0x113   : > { %p4081_p12 = pmov %p4079_p1 }
 0x114   : > { %3192 = dma.done.wait (%p4080_p10), [#allocation12], 272  }
 0x115   : > { %3194 = vsyncadd (%p4081_p12), [#allocation12], 4294967024  ;;  %p4082_p11 = pmov %p4079_p1 }
 0x116   : > { %p4083_p4 = pmov %p4079_p1 }
 0x117   : > { %3196 = dma.done.wait (%p4082_p11), [#allocation15], 16  }
 0x118   : > { %3198 = vsyncadd (%p4083_p4), [#allocation15], 4294967280  ;;  %v3229_v0 = vmov 0.0   ;;  %vm3230_vm0 = vmmov 0   ;;  %v2850_v1 = vld [vmem:[%s3981_s4] sm:$0xff]   ;;  %v2851_v2 = vld [vmem:[%s3981_s4 + $0x8] sm:$0xff]  }
 0x119   : > { %2569 = vmatprep.subr.bf16.mxu1 %v3229_v0  ;;  %2573 = vmatprep.mubr.msk.bf16.mxu1 %vm3230_vm0, %v3229_v0  ;;  %vm807_vm1 = vcmask 261120   ;;  %v3684_v3 = vld [vmem:[%s663_s29] sm:$0xf]  ;;  %s3231_s20 = smov 120   ;;  %s3232_s15 = smov 96   ;;  %vm855_vm2 = vcmask 64512  }
 0x11a   : > { %2583 = vmatprep.subr.bf16.mxu0 %v3229_v0  ;;  %2585 = vmatprep.mubr.msk.bf16.mxu0 %vm3230_vm0, %v3229_v0  ;;  %s3233_s16 = smov 80   ;;  %s3234_s14 = smov 88   ;;  %v781_v20 = vld [vmem:[%s3651_s10] sm:$0x3]  ;;  %vm919_vm4 = vcmask 1043456   ;;  %vm1306_vm5 = vcmask 130048  }
 0x11b   : > { %2570 = vmatpush3.bf16.msra.mxu1 %v2850_v1  ;;  %s3235_s5 = smov 72   ;;  %s3236_s25 = smov 112   ;;  %v782_v21 = vunpack.c.0.s8 %v781_v20  ;;  %vm1308_vm6 = vcmask 195584   ;;  %vm2171_vm8 = vcmask 523264   ;;  %vm2246_vm9 = vcmask 257024  }
 0x11c   : > { %2571 = vmatprep.subr.bf16.mxu1 %v3229_v0  ;;  %s3237_s19 = smov 104   ;;  %s3238_s7 = smov 56  }
 0x11d   : > { %v783_v22 = vcvt.s32.f32 %v782_v21  ;;  %s3239_s3 = smov 64   ;;  %s3240_s13 = smov 40  }
 0x11e   : > { %s3241_s29 = smov 48   ;;  %s3242_s23 = smov 8  }
 0x11f   : > { %2572 = vmatpush3.bf16.msra.mxu1 %v2851_v2  ;;  %vm784_vm3 = vcmp.ne.f32.partialorder %v783_v22, 0.0  ;;  %s4084_s10 = sld [smem:[#allocation33_spill]]  ;;  %s3243_s0 = smov 16  }
 0x120   : > { %2577 = vmatprep.subr.bf16.mxu1 %v3229_v0  ;;  %v785_v23 = vsel %vm784_vm3, -1e+30, %v3229_v0  ;;  %s3244_s6 = smov 24   ;;  %p771_p7 = scmp.lt.s32.totalorder %s3367_s2, 1 }
 0x121   : > { %s4087_s1 = sld [smem:[#allocation34_spill]]  ;;  %s4095_s24 = sshll.u32 %s3639_s18, 2 }
 0x122   : > { %2574 = vmatmul.mubr.msk.bf16.vlgmr.msra.gmra.mrb[0].mxu1 %vm807_vm1, %v3684_v3 }
 0x123   : > { %2579 = vmatprep.mubr.msk.bf16.mxu1 %vm3230_vm0, %v3229_v0 }
 0x1f5   : > { %v845_v4 = vpop.f32.mrb[0].mxu1 }
 0x1f6   : > { %v3691_v5 = vpack.c.bf16 %v845_v4, %v845_v4  ;;  %v2575_v6 = vpop.f32.mrb[1].mxu1 }
 0x1f7   : > { %v848_v7 = vpop.f32.mrb[2].mxu1 }
 0x1f8   : > { %963 = vrot.lane.b32.xlu1 %v3691_v5, %s3231_s20  ;;  %853 = vrot.lane.b32.xlu0 %v3691_v5, %s3232_s15  ;;  %v2576_v8 = vpop.f32.mrb[3].mxu1 }
 0x1fc   : > { %1075 = vrot.lane.b32.xlu1 %v3691_v5, %s3233_s16  ;;  %965 = vrot.lane.b32.xlu0 %v3691_v5, %s3234_s14 }
 0x200   : > { %1185 = vrot.lane.b32.xlu1 %v3691_v5, %s3235_s5  ;;  %1073 = vrot.lane.b32.xlu0 %v3691_v5, %s3236_s25 }
 0x204   : > { %1183 = vrot.lane.b32.xlu0 %v3691_v5, %s3237_s19 }
 0x26a   : > { %v854_v9 = vpop.permute.xlu0 %853  ;;  %v964_v12 = vpop.permute.xlu1 %963 }
 0x26b   : > { %v860_v10 = vsel %vm855_vm2, %v854_v9, 0 }
 0x26c   : > { %2578 = vmatpush3.bf16.xpose.msra.mxu1 %v860_v10 }
 0x26d   : > { %2589 = vmatprep.subr.bf16.mxu1 %v3229_v0 }
 0x26e   : > { %v966_v11 = vpop.permute.xlu0 %965  ;;  %v1076_v14 = vpop.permute.xlu1 %1075 }
 0x26f   : > { %v971_v13 = vsel %vm855_vm2, %v966_v11, 0  ;;  %v1081_v15 = vsel %vm855_vm2, %v1076_v14, 0 }
 0x272   : > { %v1186_v16 = vpop.permute.xlu1 %1185  ;;  %v1074_v17 = vpop.permute.xlu0 %1073 }
 0x273   : > { %2580 = vmatmul.mubr.msk.bf16.vlgmr.msra.gmra.mrb[4].mxu1 %vm855_vm2, %v3691_v5  ;;  %v1191_v18 = vsel %vm855_vm2, %v1186_v16, 0 }
 0x274   : > { %2590 = vmatpush3.bf16.xpose.msra.mxu1 %v971_v13  ;;  %2591 = vmatprep.mubr.msk.bf16.mxu1 %vm3230_vm0, %v3229_v0 }
 0x275   : > { %2601 = vmatprep.subr.bf16.mxu1 %v3229_v0 }
 0x276   : > { %v1184_v19 = vpop.permute.xlu0 %1183 }
 0x27b   : > { %2592 = vmatmul.mubr.msk.bf16.vlgmr.msra.gmra.mrb[8].mxu1 %vm855_vm2, %v964_v12 }
 0x27c   : > { %2602 = vmatpush3.bf16.xpose.msra.mxu1 %v1081_v15  ;;  %2603 = vmatprep.mubr.msk.bf16.mxu1 %vm3230_vm0, %v3229_v0 }
 0x27d   : > { %2613 = vmatprep.subr.bf16.mxu1 %v3229_v0 }
 0x283   : > { %2604 = vmatmul.mubr.msk.bf16.vlgmr.msra.gmra.mrb[12].mxu1 %vm855_vm2, %v1074_v17 }
 0x284   : > { %2614 = vmatpush3.bf16.xpose.msra.mxu1 %v1191_v18  ;;  %2615 = vmatprep.mubr.msk.bf16.mxu1 %vm3230_vm0, %v3229_v0 }
 0x285   : > { %2625 = vmatprep.subr.bf16.mxu1 %v3229_v0 }
 0x28b   : > { %2616 = vmatmul.mubr.msk.bf16.vlgmr.msra.gmra.mrb[16].mxu1 %vm855_vm2, %v1184_v19 }
 0x28c   : > { %2629 = vmatprep.mubr.msk.bf16.mxu1 %vm3230_vm0, %v3229_v0 }
 0x346   : > { %v896_v24 = vpop.f32.mrb[4].mxu1 }
 0x347   : > { %v897_v25 = vadd.f32 %v896_v24, %v785_v23  ;;  %v2581_v26 = vpop.f32.mrb[5].mxu1 }
 0x348   : > { %v899_v27 = vpop.f32.mrb[6].mxu1 }
 0x349   : > { %v2582_v28 = vpop.f32.mrb[7].mxu1  ;;  %v902_v29 = vsel %vm855_vm2, %v897_v25, -inf }
 0x34a   : > { %903 = vmax.xlane.f32.xlu1 %v902_v29 }
 0x34e   : > { %v1007_v30 = vpop.f32.mrb[8].mxu1 }
 0x34f   : > { %v1008_v31 = vadd.f32 %v1007_v30, %v785_v23  ;;  %v2593_v32 = vpop.f32.mrb[9].mxu1 }
 0x350   : > { %v1010_v33 = vpop.f32.mrb[10].mxu1 }
 0x351   : > { %v2594_v34 = vpop.f32.mrb[11].mxu1  ;;  %v1013_v35 = vsel %vm855_vm2, %v1008_v31, -inf }
 0x352   : > { %1014 = vmax.xlane.f32.xlu0 %v1013_v35 }
 0x356   : > { %v1117_v36 = vpop.f32.mrb[12].mxu1 }
 0x357   : > { %v1118_v37 = vadd.f32 %v1117_v36, %v785_v23  ;;  %v2605_v38 = vpop.f32.mrb[13].mxu1 }
 0x358   : > { %v1120_v39 = vpop.f32.mrb[14].mxu1  ;;  %v2852_v38 = vld [vmem:[%s4084_s10] sm:$0xff]  }
 0x359   : > { %v2606_v40 = vpop.f32.mrb[15].mxu1  ;;  %v1123_v41 = vsel %vm855_vm2, %v1118_v37, -inf  ;;  %2626 = vmatpush3.bf16.msra.mxu1 %v2852_v38  ;;  %v2853_v39 = vld [vmem:[%s4084_s10 + $0x8] sm:$0xff]  }
 0x35a   : > { %1124 = vmax.xlane.f32.xlu0 %v1123_v41  ;;  %2627 = vmatprep.subr.bf16.mxu1 %v3229_v0 }
 0x35d   : > { %2628 = vmatpush3.bf16.msra.mxu1 %v2853_v39  ;;  %v786_v39 = vld [vmem:[%s3657_s17] sm:$0x3]  ;;  %s4091_s17 = sld [smem:[#allocation41_spill]] }
 0x35e   : > { %v1227_v42 = vpop.f32.mrb[16].mxu1  ;;  %2641 = vmatprep.subr.bf16.mxu1 %v3229_v0 }
 0x35f   : > { %v1228_v43 = vadd.f32 %v1227_v42, %v785_v23  ;;  %v2617_v44 = vpop.f32.mrb[17].mxu1 }
 0x360   : > { %v1230_v45 = vpop.f32.mrb[18].mxu1 }
 0x361   : > { %v2618_v46 = vpop.f32.mrb[19].mxu1  ;;  %v1233_v47 = vsel %vm855_vm2, %v1228_v43, -inf }
 0x362   : > { %1234 = vmax.xlane.f32.xlu1 %v1233_v47 }
 0x3d7   : > { %v904_v48 = vpop.xlane.xlu1 %903 }
 0x3d8   : > { %v905_v49 = vsub.f32 %v897_v25, %v904_v48 }
 0x3da   : > { %v906_v50 = vmul.f32 1.442695, %v905_v49 }
 0x3dc   : > { %2867 = vpow2.f32 %v906_v50 }
 0x3df   : > { %v1015_v51 = vpop.xlane.xlu0 %1014 }
 0x3e0   : > { %v1016_v52 = vsub.f32 %v1008_v31, %v1015_v51 }
 0x3e2   : > { %v1017_v53 = vmul.f32 1.442695, %v1016_v52 }
 0x3e4   : > { %2869 = vpow2.f32 %v1017_v53 }
 0x3e6   : > { %v2868_v54 = vpop.eup %2867 }
 0x3e7   : > { %v1125_v55 = vpop.xlane.xlu0 %1124  ;;  %v908_v56 = vsel %vm855_vm2, %v2868_v54, 0.0 }
 0x3e8   : > { %v1126_v57 = vsub.f32 %v1118_v37, %v1125_v55  ;;  %909 = vadd.xlane.f32.xlu0 %v908_v56  ;;  %v778_v55 = vunpack.c.l.bf16 %v3684_v3 }
 0x3ea   : > { %v1127_v58 = vmul.f32 1.442695, %v1126_v57 }
 0x3ec   : > { %2871 = vpow2.f32 %v1127_v58 }
 0x3ee   : > { %v2870_v59 = vpop.eup %2869 }
 0x3ef   : > { %v1019_v60 = vsel %vm855_vm2, %v2870_v59, 0.0  ;;  %v1235_v63 = vpop.xlane.xlu1 %1234 }
 0x3f0   : > { %1020 = vadd.xlane.f32.xlu1 %v1019_v60  ;;  %v1236_v1 = vsub.f32 %v1228_v43, %v1235_v63 }
 0x3f2   : > { %v1237_v2 = vmul.f32 1.442695, %v1236_v1 }
 0x3f4   : > { %2873 = vpow2.f32 %v1237_v2 }
 0x3f6   : > { %v2872_v61 = vpop.eup %2871 }
 0x3f7   : > { %v1129_v62 = vsel %vm855_vm2, %v2872_v61, 0.0 }
 0x3f8   : > { %1130 = vadd.xlane.f32.xlu0 %v1129_v62 }
 0x3fe   : > { %v2874_v4 = vpop.eup %2873 }
 0x3ff   : > { %v1239_v6 = vsel %vm855_vm2, %v2874_v4, 0.0 }
 0x401   : > { %1025 = vrot.lane.b32.xlu1 %v3691_v5, %s3238_s7 }
 0x40e   : > { %914 = vrot.lane.b32.xlu0 %v3691_v5, %s3239_s3  ;;  %s4086_s3 = sld [smem:[#allocation30_spill]] }
 0x412   : > { %1245 = vrot.lane.b32.xlu0 %v3691_v5, %s3240_s13  ;;  %s4085_s13 = sld [smem:[#allocation36_spill]] }
 0x418   : > { %v2854_v62 = vld [vmem:[%s4085_s13] sm:$0xff]  }
 0x425   : > { %1240 = vadd.xlane.f32.xlu1 %v1239_v6  ;;  %v2855_v6 = vld [vmem:[%s4085_s13 + $0x8] sm:$0xff]  }
 0x436   : > { %1135 = vrot.lane.b32.xlu1 %v3691_v5, %s3241_s29  ;;  %s772_s29 = scalar_select %p771_p7, %s3367_s2, 1 }
 0x438   : > { %s2513_s22 = sshll.u32 %s772_s29, 3 }
 0x439   : > { %s775_s9 = scalar_lea.vmem %s4086_s3, %s2513_s22  ;;  %s770_s22 = scalar_lea.vmem [#allocation16], %s4095_s24 }
 0x43a   : > { %s2262_s27 = sshll.u32 %s770_s22, 4  ;;  %s3935_s27 = int_to_ptr.vmem [resolvable:$true] %s2262_s27 }
 0x475   : > { %v910_v7 = vpop.xlane.xlu0 %909 }
 0x476   : > { %2875 = vrcp.f32 %v910_v7  ;;  %v2856_v7 = vld [vmem:[%s775_s9] sm:$0xff]   ;;  %s4090_s9 = sld [smem:[#allocation39_spill]] }
 0x47d   : > { %v1021_v8 = vpop.xlane.xlu1 %1020 }
 0x47e   : > { %2877 = vrcp.f32 %v1021_v8  ;;  %v2857_v8 = vld [vmem:[#allocation10] sm:$0xff]  }
 0x480   : > { %v2876_v9 = vpop.eup %2875 }
 0x481   : > { %v912_v11 = vmul.f32 %v2876_v9, %v2868_v54  ;;  %v1026_v14 = vpop.permute.xlu1 %1025  ;;  %v2858_v9 = vld [vmem:[#allocation10 + $0x8] sm:$0xff]  }
 0x482   : > { %v1031_v17 = vsel %vm919_vm4, %v1026_v14, 0  ;;  %v2475_v14 = vld [vmem:[%s4087_s1] ss:$0 sm:$0xff]  ;;  %s2249_s1 = scalar_lea.sflag [#allocation4], %s3639_s18 }
 0x483   : > { %v913_v15 = vpack.c.bf16 %v912_v11, %v912_v11 }
 0x485   : > { %v1131_v10 = vpop.xlane.xlu0 %1130 }
 0x486   : > { %2879 = vrcp.f32 %v1131_v10 }
 0x488   : > { %v2878_v16 = vpop.eup %2877 }
 0x489   : > { %v915_v12 = vpop.permute.xlu0 %914  ;;  %v1023_v5 = vmul.f32 %v2878_v16, %v2870_v59  ;;  %v2476_v16 = vld [vmem:[#allocation8] ss:$0 sm:$0xff] }
 0x48a   : > { %v921_v13 = vsel %vm919_vm4, %v915_v12, 0 }
 0x48b   : > { %2584 = vmatpush3.bf16.msra.mxu0 %v921_v13  ;;  %v1024_v18 = vpack.c.bf16 %v1023_v5, %v1023_v5 }
 0x48c   : > { %2595 = vmatprep.subr.bf16.mxu0 %v3229_v0 }
 0x48d   : > { %v1246_v24 = vpop.permute.xlu0 %1245 }
 0x48e   : > { %2586 = vmatmul.mubr.msk.bf16.vlgmr.msra.gmra.mrb[0].mxu0 %vm855_vm2, %v913_v15  ;;  %v1251_v26 = vsel %vm919_vm4, %v1246_v24, 0 }
 0x48f   : > { %2596 = vmatpush3.bf16.msra.mxu0 %v1031_v17  ;;  %2597 = vmatprep.mubr.msk.bf16.mxu0 %vm3230_vm0, %v3229_v0 }
 0x490   : > { %2607 = vmatprep.subr.bf16.mxu0 %v3229_v0  ;;  %v2880_v19 = vpop.eup %2879 }
 0x491   : > { %v1133_v21 = vmul.f32 %v2880_v19, %v2872_v61 }
 0x493   : > { %v1134_v25 = vpack.c.bf16 %v1133_v21, %v1133_v21 }
 0x496   : > { %2598 = vmatmul.mubr.msk.bf16.vlgmr.msra.gmra.mrb[4].mxu0 %vm855_vm2, %v1024_v18 }
 0x497   : > { %2609 = vmatprep.mubr.msk.bf16.mxu0 %vm3230_vm0, %v3229_v0 }
 0x4b2   : > { %v1241_v20 = vpop.xlane.xlu1 %1240 }
 0x4b3   : > { %2881 = vrcp.f32 %v1241_v20 }
 0x4b6   : > { %v1136_v22 = vpop.permute.xlu1 %1135 }
 0x4b7   : > { %v1141_v23 = vsel %vm919_vm4, %v1136_v22, 0 }
 0x4b8   : > { %2608 = vmatpush3.bf16.msra.mxu0 %v1141_v23 }
 0x4b9   : > { %2619 = vmatprep.subr.bf16.mxu0 %v3229_v0 }
 0x4bb   : > { %2610 = vmatmul.mubr.msk.bf16.vlgmr.msra.gmra.mrb[8].mxu0 %vm855_vm2, %v1134_v25 }
 0x4bc   : > { %2620 = vmatpush3.bf16.msra.mxu0 %v1251_v26  ;;  %2621 = vmatprep.mubr.msk.bf16.mxu0 %vm3230_vm0, %v3229_v0 }
 0x4bd   : > { %v2882_v27 = vpop.eup %2881  ;;  %2633 = vmatprep.subr.bf16.mxu0 %v3229_v0 }
 0x4be   : > { %v1243_v28 = vmul.f32 %v2882_v27, %v2874_v4 }
 0x4c0   : > { %v1244_v29 = vpack.c.bf16 %v1243_v28, %v1243_v28 }
 0x4c3   : > { %2622 = vmatmul.mubr.msk.bf16.vlgmr.msra.gmra.mrb[12].mxu0 %vm855_vm2, %v1244_v29 }
 0x4c4   : > { %2637 = vmatprep.mubr.msk.bf16.mxu0 %vm3230_vm0, %v3229_v0  ;;  %2634 = vmatpush3.bf16.msra.mxu0 %v2857_v8 }
 0x4c5   : > { %2635 = vmatprep.subr.bf16.mxu0 %v3229_v0 }
 0x4c8   : > { %2636 = vmatpush3.bf16.msra.mxu0 %v2858_v9 }
 0x4c9   : > { %2649 = vmatprep.subr.bf16.mxu0 %v3229_v0 }
 0x561   : > { %v957_v30 = vpop.f32.mrb[0].mxu0 }
 0x562   : > { %v2587_v31 = vpop.f32.mrb[1].mxu0 }
 0x563   : > { %v960_v32 = vpop.f32.mrb[2].mxu0 }
 0x564   : > { %v2588_v33 = vpop.f32.mrb[3].mxu0 }
 0x569   : > { %v1067_v34 = vpop.f32.mrb[4].mxu0 }
 0x56a   : > { %1294 = vrot.lane.b32.xlu1 %v1067_v34, %s3242_s23  ;;  %v2599_v35 = vpop.f32.mrb[5].mxu0 }
 0x56b   : > { %v1070_v36 = vpop.f32.mrb[6].mxu0 }
 0x56c   : > { %v2600_v37 = vpop.f32.mrb[7].mxu0 }
 0x58e   : > { %v1177_v40 = vpop.f32.mrb[8].mxu0 }
 0x58f   : > { %1298 = vrot.lane.b32.xlu0 %v1177_v40, %s3243_s0  ;;  %v2611_v41 = vpop.f32.mrb[9].mxu0  ;;  %v787_v40 = vunpack.c.0.s8 %v786_v39 }
 0x590   : > { %v1180_v42 = vpop.f32.mrb[10].mxu0 }
 0x591   : > { %v2612_v43 = vpop.f32.mrb[11].mxu0  ;;  %v788_v41 = vcvt.s32.f32 %v787_v40 }
 0x593   : > { %vm789_vm7 = vcmp.ne.f32.partialorder %v788_v41, 0.0 }
 0x594   : > { %v790_v42 = vsel %vm789_vm7, -1e+30, %v3229_v0 }
 0x596   : > { %v1287_v44 = vpop.f32.mrb[12].mxu0 }
 0x597   : > { %1302 = vrot.lane.b32.xlu1 %v1287_v44, %s3244_s6  ;;  %v2623_v45 = vpop.f32.mrb[13].mxu0 }
 0x598   : > { %v1290_v46 = vpop.f32.mrb[14].mxu0 }
 0x599   : > { %v2624_v47 = vpop.f32.mrb[15].mxu0 }
 0x5dc   : > { %v1295_v48 = vpop.permute.xlu1 %1294 }
 0x5dd   : > { %v1305_v50 = vsel %vm855_vm2, %v957_v30, %v1295_v48 }
 0x601   : > { %v1299_v49 = vpop.permute.xlu0 %1298 }
 0x602   : > { %v1307_v51 = vsel %vm1306_vm5, %v1305_v50, %v1299_v49 }
 0x609   : > { %v1303_v52 = vpop.permute.xlu1 %1302 }
 0x60a   : > { %v1309_v53 = vsel %vm1308_vm6, %v1307_v51, %v1303_v52 }
 0x60b   : > { %v1310_v54 = vpack.c.bf16 %v1309_v53, %v1309_v53 }
 0x60d   : > { %2630 = vmatmul.mubr.msk.bf16.vlgmr.msra.gmra.mrb[20].mxu1 %vm807_vm1, %v1310_v54 }
 0x60e   : > { %2645 = vmatprep.mubr.msk.bf16.mxu1 %vm3230_vm0, %v3229_v0  ;;  %2642 = vmatpush3.bf16.msra.mxu1 %v2854_v62 }
 0x60f   : > { %2643 = vmatprep.subr.bf16.mxu1 %v3229_v0 }
 0x612   : > { %2644 = vmatpush3.bf16.msra.mxu1 %v2855_v6 }
 0x613   : > { %2655 = vmatprep.subr.bf16.mxu1 %v3229_v0 }
 0x615   : > { %2646 = vmatmul.mubr.msk.bf16.vlgmr.msra.gmra.mrb[24].mxu1 %vm807_vm1, %v2856_v7 }
 0x616   : > { %2657 = vmatprep.mubr.msk.bf16.mxu1 %vm3230_vm0, %v3229_v0 }
 0x6e0   : > { %v1364_v56 = vpop.f32.mrb[20].mxu1 }
 0x6e1   : > { %v1370_v57 = vadd.f32 %v1364_v56, %v778_v55  ;;  %v2631_v58 = vpop.f32.mrb[21].mxu1 }
 0x6e2   : > { %v1367_v59 = vpop.f32.mrb[22].mxu1 }
 0x6e3   : > { %v2632_v60 = vpop.f32.mrb[23].mxu1  ;;  %v1373_v61 = vsel %vm807_vm1, %v1370_v57, 0.0 }
 0x6e4   : > { %1374 = vadd.xlane.f32.xlu0 %v1373_v61 }
 0x6e8   : > { %v1519_v19 = vpop.f32.mrb[24].mxu1 }
 0x6e9   : > { %v2647_v20 = vpop.f32.mrb[25].mxu1 }
 0x6ea   : > { %v1522_v21 = vpop.f32.mrb[26].mxu1 }
 0x6eb   : > { %v3810_v22 = vpack.c.bf16 %v1522_v21, %v1519_v19  ;;  %v2648_v23 = vpop.f32.mrb[27].mxu1 }
 0x6ed   : > { %v1532_v24 = vsel %vm855_vm2, %v3810_v22, 0 }
 0x6fa   : > { %1636 = vrot.lane.b32.xlu0 %v3810_v22, %s3231_s20 }
 0x6fe   : > { %1744 = vrot.lane.b32.xlu0 %v3810_v22, %s3236_s25 }
 0x702   : > { %1852 = vrot.lane.b32.xlu0 %v3810_v22, %s3237_s19 }
 0x771   : > { %v1375_v63 = vpop.xlane.xlu0 %1374 }
 0x772   : > { %v1377_v1 = vmul.f32 0.03125, %v1375_v63 }
 0x774   : > { %v1378_v3 = vsub.f32 %v1370_v57, %v1377_v1 }
 0x775   : > { %v1637_v26 = vpop.permute.xlu0 %1636 }
 0x776   : > { %v1379_v2 = vmul.f32 %v1378_v3, %v1378_v3  ;;  %v1642_v29 = vsel %vm855_vm2, %v1637_v26, 0 }
 0x778   : > { %v1380_v4 = vsel %vm807_vm1, %v1379_v2, 0.0 }
 0x779   : > { %1381 = vadd.xlane.f32.xlu1 %v1380_v4  ;;  %v1745_v32 = vpop.permute.xlu0 %1744 }
 0x77a   : > { %v1750_v34 = vsel %vm855_vm2, %v1745_v32, 0 }
 0x77d   : > { %v1853_v35 = vpop.permute.xlu0 %1852 }
 0x77e   : > { %v1858_v37 = vsel %vm855_vm2, %v1853_v35, 0 }
 0x806   : > { %v1382_v10 = vpop.xlane.xlu1 %1381 }
 0x807   : > { %v1383_v11 = vmul.f32 0.03125, %v1382_v10 }
 0x809   : > { %v1384_v12 = vadd.f32 1e-05, %v1383_v11 }
 0x80b   : > { %2883 = vrsqrt.f32 %v1384_v12 }
 0x815   : > { %v2884_v13 = vpop.eup %2883 }
 0x816   : > { %v1386_v15 = vmul.f32 %v2884_v13, %v1378_v3 }
 0x818   : > { %v1393_v17 = vmul.f32 %v2475_v14, %v1386_v15 }
 0x81a   : > { %v3803_v5 = vadd.f32 %v2476_v16, %v1393_v17 }
 0x81c   : > { %v1401_v18 = vpack.c.bf16 %v3803_v5, %v3803_v5 }
 0x81e   : > { %2638 = vmatmul.mubr.msk.bf16.vlgmr.msra.gmra.mrb[16].mxu0 %vm807_vm1, %v1401_v18 }
 0x81f   : > { %2651 = vmatprep.mubr.msk.bf16.mxu0 %vm3230_vm0, %v3229_v0  ;;  %2650 = vmatpush3.bf16.xpose.msra.mxu0 %v1532_v24 }
 0x820   : > { %2661 = vmatprep.subr.bf16.mxu0 %v3229_v0 }
 0x8f1   : > { %v1455_v25 = vpop.f32.mrb[16].mxu0 }
 0x8f2   : > { %v1526_v27 = vpack.c.bf16 %v1455_v25, %v1455_v25  ;;  %v2639_v28 = vpop.f32.mrb[17].mxu0 }
 0x8f3   : > { %v1458_v30 = vpop.f32.mrb[18].mxu0 }
 0x8f4   : > { %1634 = vrot.lane.b32.xlu1 %v1526_v27, %s3231_s20  ;;  %v2640_v31 = vpop.f32.mrb[19].mxu0  ;;  %2652 = vmatmul.mubr.msk.bf16.vlgmr.msra.gmra.mrb[20].mxu0 %vm855_vm2, %v1526_v27 }
 0x8f5   : > { %2662 = vmatpush3.bf16.xpose.msra.mxu0 %v1642_v29  ;;  %2663 = vmatprep.mubr.msk.bf16.mxu0 %vm3230_vm0, %v3229_v0 }
 0x8f6   : > { %2673 = vmatprep.subr.bf16.mxu0 %v3229_v0 }
 0x8f8   : > { %1742 = vrot.lane.b32.xlu1 %v1526_v27, %s3236_s25 }
 0x8fc   : > { %1850 = vrot.lane.b32.xlu1 %v1526_v27, %s3237_s19  ;;  %s4089_s19 = sld [smem:[#allocation40_spill]] }
 0x966   : > { %v1635_v33 = vpop.permute.xlu1 %1634 }
 0x967   : > { %2664 = vmatmul.mubr.msk.bf16.vlgmr.msra.gmra.mrb[24].mxu0 %vm855_vm2, %v1635_v33 }
 0x968   : > { %2674 = vmatpush3.bf16.xpose.msra.mxu0 %v1750_v34  ;;  %2675 = vmatprep.mubr.msk.bf16.mxu0 %vm3230_vm0, %v3229_v0 }
 0x969   : > { %2685 = vmatprep.subr.bf16.mxu0 %v3229_v0 }
 0x96a   : > { %v1743_v36 = vpop.permute.xlu1 %1742 }
 0x96e   : > { %v1851_v38 = vpop.permute.xlu1 %1850 }
 0x96f   : > { %2676 = vmatmul.mubr.msk.bf16.vlgmr.msra.gmra.mrb[28].mxu0 %vm855_vm2, %v1743_v36 }
 0x970   : > { %2686 = vmatpush3.bf16.xpose.msra.mxu0 %v1858_v37  ;;  %2687 = vmatprep.mubr.msk.bf16.mxu0 %vm3230_vm0, %v3229_v0 }
 0x971   : > { %2697 = vmatprep.subr.bf16.mxu0 %v3229_v0 }
 0x977   : > { %2688 = vmatmul.mubr.msk.bf16.vlgmr.msra.gmra.mrb[32].mxu0 %vm855_vm2, %v1851_v38 }
 0x978   : > { %2701 = vmatprep.mubr.msk.bf16.mxu0 %vm3230_vm0, %v3229_v0 }
 0x9c7   : > { %v1568_v43 = vpop.f32.mrb[20].mxu0 }
 0x9c8   : > { %v1569_v44 = vadd.f32 %v1568_v43, %v790_v42  ;;  %v2653_v45 = vpop.f32.mrb[21].mxu0 }
 0x9c9   : > { %v1571_v46 = vpop.f32.mrb[22].mxu0 }
 0x9ca   : > { %v2654_v47 = vpop.f32.mrb[23].mxu0  ;;  %v1574_v48 = vsel %vm1306_vm5, %v1569_v44, -inf }
 0x9cb   : > { %1575 = vmax.xlane.f32.xlu0 %v1574_v48 }
 0xa3a   : > { %v1678_v49 = vpop.f32.mrb[24].mxu0 }
 0xa3b   : > { %v1679_v50 = vadd.f32 %v1678_v49, %v790_v42  ;;  %v2665_v51 = vpop.f32.mrb[25].mxu0  ;;  %v2859_v49 = vld [vmem:[#allocation11] sm:$0xff]  }
 0xa3c   : > { %v1681_v52 = vpop.f32.mrb[26].mxu0  ;;  %2698 = vmatpush3.bf16.msra.mxu0 %v2859_v49 }
 0xa3d   : > { %v2666_v53 = vpop.f32.mrb[27].mxu0  ;;  %v1684_v54 = vsel %vm1306_vm5, %v1679_v50, -inf  ;;  %2699 = vmatprep.subr.bf16.mxu0 %v3229_v0 }
 0xa3e   : > { %1685 = vmax.xlane.f32.xlu1 %v1684_v54  ;;  %v2860_v54 = vld [vmem:[#allocation11 + $0x8] sm:$0xff]  }
 0xa40   : > { %2700 = vmatpush3.bf16.msra.mxu0 %v2860_v54 }
 0xa41   : > { %2713 = vmatprep.subr.bf16.mxu0 %v3229_v0 }
 0xa42   : > { %v1786_v55 = vpop.f32.mrb[28].mxu0 }
 0xa43   : > { %v1787_v56 = vadd.f32 %v1786_v55, %v790_v42  ;;  %v2677_v57 = vpop.f32.mrb[29].mxu0 }
 0xa44   : > { %v1789_v58 = vpop.f32.mrb[30].mxu0 }
 0xa45   : > { %v2678_v59 = vpop.f32.mrb[31].mxu0  ;;  %v1792_v60 = vsel %vm1306_vm5, %v1787_v56, -inf }
 0xa46   : > { %1793 = vmax.xlane.f32.xlu0 %v1792_v60 }
 0xa4a   : > { %v1894_v61 = vpop.f32.mrb[32].mxu0 }
 0xa4b   : > { %v1895_v62 = vadd.f32 %v1894_v61, %v790_v42  ;;  %v2689_v63 = vpop.f32.mrb[33].mxu0 }
 0xa4c   : > { %v1897_v1 = vpop.f32.mrb[34].mxu0 }
 0xa4d   : > { %v2690_v3 = vpop.f32.mrb[35].mxu0  ;;  %v1900_v2 = vsel %vm1306_vm5, %v1895_v62, -inf }
 0xa4e   : > { %1901 = vmax.xlane.f32.xlu0 %v1900_v2 }
 0xa58   : > { %v1576_v4 = vpop.xlane.xlu0 %1575 }
 0xa59   : > { %v1577_v6 = vsub.f32 %v1569_v44, %v1576_v4 }
 0xa5b   : > { %v1578_v7 = vmul.f32 1.442695, %v1577_v6 }
 0xa5d   : > { %2885 = vpow2.f32 %v1578_v7 }
 0xa67   : > { %v2886_v8 = vpop.eup %2885 }
 0xa68   : > { %v1580_v9 = vsel %vm1306_vm5, %v2886_v8, 0.0 }
 0xa69   : > { %1581 = vadd.xlane.f32.xlu1 %v1580_v9 }
 0xa7a   : > { %1587 = vrot.lane.b32.xlu1 %v3810_v22, %s3232_s15  ;;  %s4088_s15 = sld [smem:[#allocation38_spill]] }
 0xacb   : > { %v1686_v10 = vpop.xlane.xlu1 %1685 }
 0xacc   : > { %v1687_v11 = vsub.f32 %v1679_v50, %v1686_v10 }
 0xace   : > { %v1688_v12 = vmul.f32 1.442695, %v1687_v11 }
 0xad0   : > { %2887 = vpow2.f32 %v1688_v12 }
 0xad3   : > { %v1794_v13 = vpop.xlane.xlu0 %1793 }
 0xad4   : > { %v1795_v14 = vsub.f32 %v1787_v56, %v1794_v13 }
 0xad6   : > { %v1796_v15 = vmul.f32 1.442695, %v1795_v14 }
 0xad8   : > { %2889 = vpow2.f32 %v1796_v15 }
 0xada   : > { %v2888_v16 = vpop.eup %2887 }
 0xadb   : > { %v1902_v17 = vpop.xlane.xlu0 %1901  ;;  %v1690_v18 = vsel %vm1306_vm5, %v2888_v16, 0.0 }
 0xadc   : > { %v1903_v19 = vsub.f32 %v1895_v62, %v1902_v17  ;;  %1691 = vadd.xlane.f32.xlu0 %v1690_v18 }
 0xade   : > { %v1904_v20 = vmul.f32 1.442695, %v1903_v19  ;;  %v2861_v19 = vld [vmem:[%s4088_s15] sm:$0xff]  }
 0xae0   : > { %2891 = vpow2.f32 %v1904_v20  ;;  %v2863_v20 = vld [vmem:[%s4089_s19] sm:$0xff]  }
 0xae2   : > { %v2890_v21 = vpop.eup %2889 }
 0xae3   : > { %v1798_v23 = vsel %vm1306_vm5, %v2890_v21, 0.0 }
 0xae4   : > { %1799 = vadd.xlane.f32.xlu1 %v1798_v23 }
 0xaea   : > { %v2892_v24 = vpop.eup %2891 }
 0xaeb   : > { %v1906_v25 = vsel %vm1306_vm5, %v2892_v24, 0.0 }
 0xaec   : > { %1907 = vadd.xlane.f32.xlu0 %v1906_v25 }
 0xaf5   : > { %1804 = vrot.lane.b32.xlu1 %v3810_v22, %s3233_s16 }
 0xaf6   : > { %v1582_v26 = vpop.xlane.xlu1 %1581 }
 0xaf7   : > { %2893 = vrcp.f32 %v1582_v26 }
 0xaf9   : > { %1912 = vrot.lane.b32.xlu1 %v3810_v22, %s3235_s5  ;;  %s4093_s5 = sld [smem:[#allocation27_spill]] }
 0xafa   : > { %v1588_v27 = vpop.permute.xlu1 %1587 }
 0xafb   : > { %2656 = vmatpush3.bf16.msra.mxu1 %v1588_v27  ;;  %v2495_v27 = vld [vmem:[#allocation13] ss:$0 sm:$0xff] }
 0xafc   : > { %2667 = vmatprep.subr.bf16.mxu1 %v3229_v0 }
 0xaff   : > { %p4097_p2 = scmp.ne.s32.totalorder %s4093_s5, 0 }
 0xb01   : > { %v2894_v28 = vpop.eup %2893 }
 0xb02   : > { %v1584_v29 = vmul.f32 %v2894_v28, %v2886_v8  ;;  %1696 = vrot.lane.b32.xlu0 %v3810_v22, %s3234_s14  ;;  %s4092_s14 = sld [smem:[#allocation42_spill]] }
 0xb04   : > { %v1585_v30 = vpack.c.bf16 %v1584_v29, %v1584_v29  ;;  %v2496_v29 = vld [vmem:[#allocation14] ss:$0 sm:$0xff] }
 0xb06   : > { %2658 = vmatmul.mubr.msk.bf16.vlgmr.msra.gmra.mrb[28].mxu1 %vm1306_vm5, %v1585_v30 }
 0xb07   : > { %2669 = vmatprep.mubr.msk.bf16.mxu1 %vm3230_vm0, %v3229_v0 }
 0xb69   : > { %v1692_v31 = vpop.xlane.xlu0 %1691 }
 0xb6a   : > { %2895 = vrcp.f32 %v1692_v31 }
 0xb71   : > { %v1800_v32 = vpop.xlane.xlu1 %1799 }
 0xb72   : > { %2897 = vrcp.f32 %v1800_v32 }
 0xb74   : > { %v2896_v33 = vpop.eup %2895 }
 0xb75   : > { %v1694_v35 = vmul.f32 %v2896_v33, %v2888_v16  ;;  %v1805_v38 = vpop.permute.xlu1 %1804  ;;  %v2865_v33 = vld [vmem:[%s4089_s19 + $0x10] sm:$0xff]  }
 0xb77   : > { %v1695_v37 = vpack.c.bf16 %v1694_v35, %v1694_v35  ;;  %v2497_v35 = vld [vmem:[%s4090_s9] ss:$0 sm:$0xff]  ;;  %s4096_s9 = sld [smem:[#allocation44_spill]] }
 0xb79   : > { %v1908_v34 = vpop.xlane.xlu0 %1907  ;;  %v1913_v42 = vpop.permute.xlu1 %1912 }
 0xb7a   : > { %2899 = vrcp.f32 %v1908_v34  ;;  %v2866_v34 = vld [vmem:[%s4089_s19 + $0x18] sm:$0xff]  }
 0xb7c   : > { %v2898_v22 = vpop.eup %2897 }
 0xb7d   : > { %v1697_v36 = vpop.permute.xlu0 %1696  ;;  %v1802_v39 = vmul.f32 %v2898_v22, %v2890_v21  ;;  %v2864_v21 = vld [vmem:[%s4089_s19 + $0x8] sm:$0xff]  }
 0xb7e   : > { %2668 = vmatpush3.bf16.msra.mxu1 %v1697_v36 }
 0xb7f   : > { %2679 = vmatprep.subr.bf16.mxu1 %v3229_v0  ;;  %v1803_v40 = vpack.c.bf16 %v1802_v39, %v1802_v39 }
 0xb81   : > { %2670 = vmatmul.mubr.msk.bf16.vlgmr.msra.gmra.mrb[32].mxu1 %vm1306_vm5, %v1695_v37 }
 0xb82   : > { %2680 = vmatpush3.bf16.msra.mxu1 %v1805_v38  ;;  %2681 = vmatprep.mubr.msk.bf16.mxu1 %vm3230_vm0, %v3229_v0 }
 0xb83   : > { %2691 = vmatprep.subr.bf16.mxu1 %v3229_v0 }
 0xb84   : > { %v2900_v41 = vpop.eup %2899 }
 0xb85   : > { %v1910_v43 = vmul.f32 %v2900_v41, %v2892_v24 }
 0xb87   : > { %v1911_v44 = vpack.c.bf16 %v1910_v43, %v1910_v43 }
 0xb89   : > { %2682 = vmatmul.mubr.msk.bf16.vlgmr.msra.gmra.mrb[36].mxu1 %vm1306_vm5, %v1803_v40 }
 0xb8a   : > { %2692 = vmatpush3.bf16.msra.mxu1 %v1913_v42  ;;  %2693 = vmatprep.mubr.msk.bf16.mxu1 %vm3230_vm0, %v3229_v0 }
 0xb8b   : > { %2705 = vmatprep.subr.bf16.mxu1 %v3229_v0 }
 0xb91   : > { %2694 = vmatmul.mubr.msk.bf16.vlgmr.msra.gmra.mrb[40].mxu1 %vm1306_vm5, %v1911_v44 }
 0xb92   : > { %2709 = vmatprep.mubr.msk.bf16.mxu1 %vm3230_vm0, %v3229_v0  ;;  %2706 = vmatpush3.bf16.msra.mxu1 %v2861_v19 }
 0xb93   : > { %2707 = vmatprep.subr.bf16.mxu1 %v3229_v0 }
 0xbd9   : > { %v1627_v45 = vpop.f32.mrb[28].mxu1 }
 0xbda   : > { %v2659_v46 = vpop.f32.mrb[29].mxu1 }
 0xbdb   : > { %v1630_v47 = vpop.f32.mrb[30].mxu1 }
 0xbdc   : > { %v2660_v48 = vpop.f32.mrb[31].mxu1 }
 0xc54   : > { %v1736_v50 = vpop.f32.mrb[32].mxu1 }
 0xc55   : > { %1959 = vrot.lane.b32.xlu0 %v1736_v50, %s3242_s23  ;;  %v2671_v51 = vpop.f32.mrb[33].mxu1 }
 0xc56   : > { %v1739_v52 = vpop.f32.mrb[34].mxu1 }
 0xc57   : > { %v2672_v53 = vpop.f32.mrb[35].mxu1 }
 0xc5c   : > { %v1844_v55 = vpop.f32.mrb[36].mxu1 }
 0xc5d   : > { %1963 = vrot.lane.b32.xlu1 %v1844_v55, %s3243_s0  ;;  %v2683_v56 = vpop.f32.mrb[37].mxu1  ;;  %s4094_s0 = sld [smem:[#allocation43_spill]] }
 0xc5e   : > { %v1847_v57 = vpop.f32.mrb[38].mxu1 }
 0xc5f   : > { %v2684_v58 = vpop.f32.mrb[39].mxu1 }
 0xc60   : > { %v2507_v58 = vld [vmem:[%s4092_s14] ss:$0 sm:$0xff] }
 0xc64   : > { %v1952_v59 = vpop.f32.mrb[40].mxu1 }
 0xc65   : > { %1967 = vrot.lane.b32.xlu0 %v1952_v59, %s3244_s6  ;;  %v2695_v60 = vpop.f32.mrb[41].mxu1  ;;  %s2510_s6 = sshll.u32 %s3367_s2, 6  ;;  %s3245_s2 = smov [#allocation16]  }
 0xc66   : > { %v1955_v61 = vpop.f32.mrb[42].mxu1  ;;  %v2508_v60 = vld [vmem:[%s4094_s0] ss:$0 sm:$0xff]  ;;  %s3933_s29 = scalar_lea.hbm %s4096_s9, %s2510_s6  ;;  %s3139_s20 = sshll.u32 %s3245_s2, 4  ;;  %s3140_s20 = int_to_ptr.vmem [resolvable:$false] %s3139_s20 }
 0xc67   : > { %v2696_v62 = vpop.f32.mrb[43].mxu1  ;;  %s3141_s16 = scalar_lea.vmem %s3140_s20, 128  ;;  %p3142_p9 = scmp.lt.s32.totalorder %s3935_s27, %s3140_s20 }
 0xcc7   : > { %v1960_v63 = vpop.permute.xlu0 %1959 }
 0xcc8   : > { %v1970_v3 = vsel %vm855_vm2, %v1627_v45, %v1960_v63 }
 0xccf   : > { %v1964_v1 = vpop.permute.xlu1 %1963 }
 0xcd0   : > { %v1971_v2 = vsel %vm1306_vm5, %v1970_v3, %v1964_v1 }
 0xcd7   : > { %v1968_v4 = vpop.permute.xlu0 %1967 }
 0xcd8   : > { %v1972_v6 = vsel %vm1308_vm6, %v1971_v2, %v1968_v4 }
 0xcd9   : > { %v1973_v7 = vpack.c.bf16 %v1972_v6, %v1972_v6 }
 0xcdb   : > { %2702 = vmatmul.mubr.msk.bf16.vlgmr.msra.gmra.mrb[36].mxu0 %vm807_vm1, %v1973_v7 }
 0xcdc   : > { %2721 = vmatprep.mubr.msk.bf16.mxu0 %vm3230_vm0, %v3229_v0  ;;  %2714 = vmatpush3.bf16.msra.mxu0 %v2863_v20 }
 0xcdd   : > { %2715 = vmatprep.subr.bf16.mxu0 %v3229_v0 }
 0xce0   : > { %2716 = vmatpush3.bf16.msra.mxu0 %v2864_v21 }
 0xce1   : > { %2717 = vmatprep.subr.bf16.mxu0 %v3229_v0 }
 0xce4   : > { %2718 = vmatpush3.bf16.msra.mxu0 %v2865_v33 }
 0xce5   : > { %2719 = vmatprep.subr.bf16.mxu0 %v3229_v0  ;;  %v2501_v0 = vld [vmem:[%s4091_s17] ss:$0 sm:$0xff]  ;;  %s3135_s17 = scalar_lea.vmem %s3935_s27, 64 }
 0xce6   : > { %p3136_p5 = scmp.ne.s32.totalorder %s3935_s27, %s3135_s17  ;;  %p3143_p13 = scmp.lt.s32.totalorder %s3141_s16, %s3135_s17 }
 0xce8   : > { %2720 = vmatpush3.bf16.msra.mxu0 %v2866_v34  ;;  %p3137_p3 = pnand %p3136_p5, %p4097_p2  ;;  %p3144_p8 = por %p3143_p13, %p3142_p9 }
 0xcea   : > { %p3138_p0 = pneg %p3137_p3 }
 0xcec   : > { %p3145_p6 = pnand %p3144_p8, %p3138_p0 }
 0xdae   : > { %v2027_v8 = vpop.f32.mrb[36].mxu0 }
 0xdaf   : > { %v2033_v9 = vadd.f32 %v2027_v8, %v3803_v5  ;;  %v2703_v10 = vpop.f32.mrb[37].mxu0  ;;  %v2862_v5 = vld [vmem:[%s4088_s15 + $0x8] sm:$0xff]  }
 0xdb0   : > { %v2030_v11 = vpop.f32.mrb[38].mxu0  ;;  %2708 = vmatpush3.bf16.msra.mxu1 %v2862_v5 }
 0xdb1   : > { %v2704_v12 = vpop.f32.mrb[39].mxu0  ;;  %v2036_v13 = vsel %vm807_vm1, %v2033_v9, 0.0 }
 0xdb2   : > { %2037 = vadd.xlane.f32.xlu1 %v2036_v13 }
 0xe3f   : > { %v2038_v14 = vpop.xlane.xlu1 %2037 }
 0xe40   : > { %v2039_v15 = vmul.f32 0.03125, %v2038_v14 }
 0xe42   : > { %v2040_v16 = vsub.f32 %v2033_v9, %v2039_v15 }
 0xe44   : > { %v2041_v17 = vmul.f32 %v2040_v16, %v2040_v16 }
 0xe46   : > { %v2042_v18 = vsel %vm807_vm1, %v2041_v17, 0.0 }
 0xe47   : > { %2043 = vadd.xlane.f32.xlu0 %v2042_v18 }
 0xed4   : > { %v2044_v23 = vpop.xlane.xlu0 %2043 }
 0xed5   : > { %v2045_v24 = vmul.f32 0.03125, %v2044_v23 }
 0xed7   : > { %v2046_v25 = vadd.f32 1e-05, %v2045_v24 }
 0xed9   : > { %2901 = vrsqrt.f32 %v2046_v25 }
 0xee3   : > { %v2902_v26 = vpop.eup %2901 }
 0xee4   : > { %v2048_v28 = vmul.f32 %v2902_v26, %v2040_v16 }
 0xee6   : > { %v2055_v30 = vmul.f32 %v2495_v27, %v2048_v28 }
 0xee8   : > { %v2062_v31 = vadd.f32 %v2496_v29, %v2055_v30 }
 0xeea   : > { %v2063_v32 = vpack.c.bf16 %v2062_v31, %v2062_v31 }
 0xeec   : > { %2710 = vmatmul.mubr.msk.bf16.vlgmr.msra.gmra.mrb[44].mxu1 %vm807_vm1, %v2063_v32 }
 0xfbf   : > { %v2124_v36 = vpop.f32.mrb[44].mxu1 }
 0xfc0   : > { %v2125_v37 = vadd.f32 %v2497_v35, %v2124_v36  ;;  %v2711_v22 = vpop.f32.mrb[45].mxu1 }
 0xfc1   : > { %v2127_v38 = vpop.f32.mrb[46].mxu1 }
 0xfc2   : > { %v2130_v39 = vmax.f32 %v2125_v37, 0.0  ;;  %v2712_v40 = vpop.f32.mrb[47].mxu1 }
 0xfc4   : > { %v2131_v41 = vpack.c.bf16 %v2130_v39, %v2130_v39 }
 0xfc6   : > { %2722 = vmatmul.mubr.msk.bf16.vlgmr.msra.gmra.mrb[40].mxu0 %vm2171_vm8, %v2131_v41 }
0x1099   : > { %v2209_v42 = vpop.f32.mrb[40].mxu0 }
0x109a   : > { %v2210_v43 = vadd.f32 %v2501_v0, %v2209_v42  ;;  %v2723_v44 = vpop.f32.mrb[41].mxu0 }
0x109b   : > { %v2212_v45 = vpop.f32.mrb[42].mxu0 }
0x109c   : > { %v2724_v46 = vpop.f32.mrb[43].mxu0  ;;  %v2215_v47 = vadd.f32 %v2210_v43, %v2062_v31 }
0x109e   : > { %v2218_v48 = vsel %vm807_vm1, %v2215_v47, 0.0 }
0x109f   : > { %2219 = vadd.xlane.f32.xlu0 %v2218_v48 }
0x112c   : > { %v2220_v49 = vpop.xlane.xlu0 %2219 }
0x112d   : > { %v2221_v50 = vmul.f32 0.03125, %v2220_v49 }
0x112f   : > { %v2222_v51 = vsub.f32 %v2215_v47, %v2221_v50 }
0x1131   : > { %v2223_v52 = vmul.f32 %v2222_v51, %v2222_v51 }
0x1133   : > { %v2224_v53 = vsel %vm807_vm1, %v2223_v52, 0.0 }
0x1134   : > { %2225 = vadd.xlane.f32.xlu1 %v2224_v53 }
0x11c1   : > { %v2226_v54 = vpop.xlane.xlu1 %2225 }
0x11c2   : > { %v2227_v55 = vmul.f32 0.03125, %v2226_v54 }
0x11c4   : > { %v2228_v56 = vadd.f32 1e-05, %v2227_v55 }
0x11c6   : > { %2903 = vrsqrt.f32 %v2228_v56 }
0x11d0   : > { %v2904_v57 = vpop.eup %2903 }
0x11d1   : > { %v2230_v59 = vmul.f32 %v2904_v57, %v2222_v51 }
0x11d3   : > { %v2237_v61 = vmul.f32 %v2507_v58, %v2230_v59 }
0x11d5   : > { %v2244_v62 = vadd.f32 %v2508_v60, %v2237_v61 }
0x11d7   : > { %v2245_v63 = vpack.c.bf16 %v2244_v62, %v2244_v62 }
0x11d9   : > { %2247 = vst.msk [vmem:[%s770_s22] sm:$0xf] %vm2246_vm9, %v2245_v63 }
0x11da   : > { %3148 = shalt.err (!%p3145_p6)
}
0x11db   : > { %s3149_s18 = scalar_lea.hbm %s3933_s29, 64  ;;  %s3153_s23 = scalar_lea.hbm %s4096_s9, 128 }
0x11dc   : > { %p3150_p1 = scmp.ne.s32.totalorder %s3933_s29, %s3149_s18  ;;  %p3154_p11 = scmp.lt.u32.totalorder %s3933_s29, %s4096_s9 }
0x11dd   : > { %p3155_p4 = scmp.lt.u32.totalorder %s3153_s23, %s3149_s18  ;;  %p3157_p5 = scmp.lt.u32.totalorder %s3149_s18, %s3933_s29 }
0x11de   : > { %p3151_p10 = pnand %p3150_p1, %p4097_p2 }
0x11df   : > { %p3156_p7 = por %p3155_p4, %p3154_p11 }
0x11e0   : > { %p3152_p12 = pneg %p3151_p10 }
0x11e1   : > { %p3158_p3 = por %p3157_p5, %p3156_p7 }
0x11e3   : > { %p3159_p0 = pnand %p3158_p3, %p3152_p12 }
0x11e5   : > { %3162 = shalt.err (!%p3159_p0)
}
0x11e6   : > { %2751 = dma.vmem_to_hbm [thread:$0]  (%p4097_p2), %s3935_s27, 64, %s3933_s29, %s2249_s1  }
0x11e7 PF: > { %s4098_s24 = sld [smem:[#allocation23_spill]]  ;;  %s4099_s22 = sld [smem:[#allocation28_spill]] }
0x11e8   : > { %p4101_p13 = scmp.ge.s32.totalorder %s3217_s21, 2 }
0x11ed   : > { %s2274_s7 = sand.u32 1, %s4098_s24   ;;  %p4100_p9 = scmp.ne.s32.totalorder %s4099_s22, 0 }
0x11ee   : > { %s2275_s3 = scalar_lea.sflag [#allocation4], %s2274_s7 }
0x11ef   : > { %p2780_p8 = pnand %p4101_p13, %p4100_p9 }
0x11f1   : > { %3200 = dma.done.wait (!%p2780_p8), %s2275_s3, 64  }
0x11f2   : > { %3202 = vsyncadd (!%p2780_p8), %s2275_s3, 4294967232  ;;  %s4102_s21 = sld [smem:[#allocation25_spill]]  ;;  %s4103_s17 = sld [smem:[#allocation24_spill]] }
0x11f3   : > { %s4104_s20 = sld [smem:[#allocation26_spill]]  ;;  %s4105_s0 = smov %s3209_s30 }
0x11f8   : > { %p38_p6 = scmp.ge.s32.totalorder %s4102_s21, 4   ;;  %s4106_s30 = smov %s4103_s17 }
0x11fa   :  { %40 = sbr.rel (!%p38_p6) target bundleno = 27 (0x1b), region = 188 }
0x1201   :  { %2280 = vsyncpa [#allocation3], 1 }
0x1202   :  { %2282 = vsyncpa [#allocation3 + $0x1], 1 }
0x1203   :  { %2283 = vsyncpa [#allocation6], 1 }
0x1204   :  { %2285 = vsyncpa [#allocation6 + $0x1], 1 }
0x1205   :  { %2286 = vsyncpa [#allocation9], 1 }
0x1206   :  { %2287 = vsyncpa [#allocation12], 1 }
0x1207   :  { %2288 = vsyncpa [#allocation15], 1 }
0x1208   :  { %2289 = vsyncpa [#allocation4], 1 }
0x1209   :  { %2291 = vsyncpa [#allocation4 + $0x1], 1 }

</bundles_post_ra>
